<compile_context>
chip_gen: v7x
topology: tpu7x:2x2x1
jax: 0.10.0
libtpu: 0.0.40
codegen_flags: <defaults>
</compile_context>

<pallas_src>
import functools

import jax
import jax.numpy as jnp
from jax.experimental import pallas as pl
from jax.experimental.pallas import tpu as pltpu

TM_DEFAULT = 1024  # pixel-tile width (lane axis) per grid step


# ---------------------------------------------------------------- kernel ----
def _sampler_kernel(h_ref, w_ref, b_ref, out_ref, *, steps, ch):
    """Fused Sampler: all `steps` OutputStacks over one (Ch, TM) pixel tile.

    h_ref:   (Ch, TM)          hidden-state tile (channels = sublanes, pixels = lanes)
    w_ref:   (S, Ch+1, Ch)     per-step combined transposed weights [wh^T ; wo^T]
    b_ref:   (S, Ch+1, 1)      per-step combined transposed biases  [bh^T ; bo^T]
    out_ref: (S, TM)           per-step scalar outputs (lane-dense slab)
    """
    h = h_ref[...]                              # hidden state stays on-core (f32)
    rows = []
    # Static (unrolled) loop over forecast steps: weight/bias slices and the
    # output row index are all static, so each step is exactly one MXU matmul.
    for s in range(steps):
        hw = jnp.dot(w_ref[s], h, preferred_element_type=jnp.float32) + b_ref[s]
        rows.append(hw[ch:ch + 1, :])           # (1, TM): lane-dense output row
        h = jnp.maximum(hw[:ch, :], 0.0)        # recurrent update (sublane-aligned)
    # Single unmasked, lane-dense (S, TM) store per tile.
    out_ref[...] = jnp.concatenate(rows, axis=0).astype(out_ref.dtype)


# --------------------------------------------------------------- wrapper ----
def sampler_fused(h_cm, w_comb, b_comb, *, tm=TM_DEFAULT):
    """h_cm: (Ch, M) channels-major pixel matrix -> (S, M) step outputs."""
    Ch, M = h_cm.shape
    S = w_comb.shape[0]
    assert w_comb.shape == (S, Ch, Ch + 1)
    assert b_comb.shape == (S, 1, Ch + 1)

    # Transposed, pre-folded parameter stacks (tiny, one-time XLA transposes).
    w_t = jnp.transpose(w_comb, (0, 2, 1))      # (S, Ch+1, Ch)
    b_t = jnp.transpose(b_comb, (0, 2, 1))      # (S, Ch+1, 1)

    # Don't over-pad tiny inputs, but keep the lane axis a multiple of 128.
    tm = min(tm, pl.cdiv(M, 128) * 128)
    n_tiles = pl.cdiv(M, tm)
    Mp = n_tiles * tm
    if Mp != M:
        h_cm = jnp.pad(h_cm, ((0, 0), (0, Mp - M)))

    out = pl.pallas_call(
        functools.partial(_sampler_kernel, steps=S, ch=Ch),
        out_shape=jax.ShapeDtypeStruct((S, Mp), jnp.float32),
        grid_spec=pltpu.PrefetchScalarGridSpec(
            num_scalar_prefetch=0,
            grid=(n_tiles,),
            in_specs=[
                # Hidden-state tile: lanes = pixels (dense), sublanes = channels.
                pl.BlockSpec((Ch, tm), lambda i: (0, i)),
                # Stacked weights/biases: full arrays, VMEM-resident for the
                # whole grid (a few tens of KiB for S<=18, Ch=32).
                pl.BlockSpec((S, Ch + 1, Ch), lambda i: (0, 0, 0)),
                pl.BlockSpec((S, Ch + 1, 1), lambda i: (0, 0, 0)),
            ],
            out_specs=pl.BlockSpec((S, tm), lambda i: (0, i)),
        ),
        compiler_params=pltpu.CompilerParams(
            dimension_semantics=("parallel",),
        ),
    )(h_cm, w_t, b_t)

    return out[:, :M] if Mp != M else out


def sampler_forward(h_img, params, forecast_steps):
    """h_img: (N, Ch, W, H) -> out: (N, forecast_steps, W, H).

    Mirrors Sampler.forward: each OutputStack produces (output, h); outputs are
    concatenated along dim=1.
    """
    N, Ch, W, H = h_img.shape
    # Channels-major pixel matrix: (Ch, M) with M = N*W*H.
    h_cm = jnp.transpose(h_img, (1, 0, 2, 3)).reshape(Ch, N * W * H)
    out_sm = sampler_fused(h_cm, params["w"], params["b"])           # (S, M)
    out = out_sm.reshape(forecast_steps, N, W, H)
    out = jnp.transpose(out, (1, 0, 2, 3))                           # (N, S, W, H)
    return out


# ----------------------------------------------------------------- params ---
def init_sampler_params(key, hidden_ch, forecast_steps):
    """Per-step stand-in OutputStack params, pre-folded as [wh | wo], [bh | bo]."""
    keys = jax.random.split(key, 4 * forecast_steps)
    scale = 0.1
    w_list, b_list = [], []
    for s in range(forecast_steps):
        k0, k1, k2, k3 = keys[4 * s: 4 * s + 4]
        wh = scale * jax.random.normal(k0, (hidden_ch, hidden_ch), jnp.float32)
        wo = scale * jax.random.normal(k1, (hidden_ch, 1), jnp.float32)
        bh = 0.01 * jax.random.normal(k2, (1, hidden_ch), jnp.float32)
        bo = 0.01 * jax.random.normal(k3, (1, 1), jnp.float32)
        w_list.append(jnp.concatenate([wh, wo], axis=1))    # (Ch, Ch+1)
        b_list.append(jnp.concatenate([bh, bo], axis=1))    # (1,  Ch+1)
    return {
        "w": jnp.stack(w_list),           # (S, Ch, Ch+1)
        "b": jnp.stack(b_list),           # (S, 1,  Ch+1)
    }


# ------------------------------------------------------------ pure-JAX ref --
def sampler_reference(h_pix, w_comb, b_comb):
    """h_pix: (M, Ch) pixel-major; returns (M, S) step outputs."""
    S, Ch, _ = w_comb.shape
    h = h_pix
    cols = []
    for s in range(S):
        hw = h @ w_comb[s] + b_comb[s]
        cols.append(hw[:, Ch:])
        h = jnp.maximum(hw[:, :Ch], 0.0)
    return jnp.concatenate(cols, axis=1)


if __name__ == "__main__":
    N, W, H = 2, 16, 16
    HIDDEN_CH = 32
    FORECAST_STEPS = 8   # module default is 18; small horizon for the demo

    key = jax.random.PRNGKey(0)
    k_h, k_p = jax.random.split(key)
    h_img = jax.random.normal(k_h, (N, HIDDEN_CH, W, H), jnp.float32)
    params = init_sampler_params(k_p, HIDDEN_CH, FORECAST_STEPS)

    out = sampler_forward(h_img, params, FORECAST_STEPS)
    out = jax.block_until_ready(out)
    assert out.shape == (N, FORECAST_STEPS, W, H), out.shape
    assert out.dtype == jnp.float32

    # Correctness vs a pure-JAX reference of the same stand-in math.
    h_pix = jnp.transpose(h_img, (0, 2, 3, 1)).reshape(N * W * H, HIDDEN_CH)
    ref = sampler_reference(h_pix, params["w"], params["b"])          # (M, S)
    ref = jnp.transpose(ref.reshape(N, W, H, FORECAST_STEPS), (0, 3, 1, 2))
    err = float(jnp.max(jnp.abs(out - ref)))
    assert err < 1e-3, err

    print("KERNEL_OK")
</pallas_src>

<mosaic_0001>
module attributes {stable_mosaic.version = 11 : i64} {
  func.func @_sampler_kernel(%arg0: i32, %arg1: memref<32x512xf32, #tpu.memory_space<vmem>>, %arg2: memref<8x33x32xf32, #tpu.memory_space<vmem>>, %arg3: memref<8x33x1xf32, #tpu.memory_space<vmem>>, %arg4: memref<8x512xf32, #tpu.memory_space<vmem>>) attributes {dimension_semantics = [#tpu.dimension_semantics<parallel>], iteration_bounds = array<i64: 1>, scalar_prefetch = 0 : i64, scratch_operands = 0 : i64, tpu.core_type = #tpu.core_type<tc>, window_params = [{transform_indices = @transform_0, window_bounds = array<i64: 32, 512>}, {pipeline_mode = #tpu.pipeline_mode<synchronous>, transform_indices = @transform_1, window_bounds = array<i64: 8, 33, 32>}, {pipeline_mode = #tpu.pipeline_mode<synchronous>, transform_indices = @transform_2, window_bounds = array<i64: 8, 33, 1>}, {transform_indices = @transform_3, window_bounds = array<i64: 8, 512>}]} {
    %c0 = arith.constant 0 : index
    %c0_0 = arith.constant 0 : index
    %0 = vector.load %arg1[%c0, %c0_0] : memref<32x512xf32, #tpu.memory_space<vmem>>, vector<32x512xf32>
    %c0_1 = arith.constant 0 : index
    %c0_2 = arith.constant 0 : index
    %c0_3 = arith.constant 0 : index
    %1 = vector.load %arg2[%c0_1, %c0_2, %c0_3] : memref<8x33x32xf32, #tpu.memory_space<vmem>>, vector<1x33x32xf32>
    %2 = vector.shape_cast %1 : vector<1x33x32xf32> to vector<33x32xf32>
    %cst = arith.constant dense<0.000000e+00> : vector<33x512xf32>
    %3 = tpu.matmul %2, %0, %cst {dimension_numbers = #tpu.dot_dimension_numbers<[1], [0], [0], [1], [0, 0, 1, 1], [], []>} : vector<33x32xf32>, vector<32x512xf32>, vector<33x512xf32> -> vector<33x512xf32>
    %c0_4 = arith.constant 0 : index
    %c0_5 = arith.constant 0 : index
    %c0_6 = arith.constant 0 : index
    %4 = vector.load %arg3[%c0_4, %c0_5, %c0_6] : memref<8x33x1xf32, #tpu.memory_space<vmem>>, vector<1x33x1xf32>
    %5 = vector.shape_cast %4 : vector<1x33x1xf32> to vector<33x1xf32>
    %6 = vector.broadcast %5 : vector<33x1xf32> to vector<33x512xf32>
    %7 = arith.addf %3, %6 : vector<33x512xf32>
    %8 = vector.extract_strided_slice %7 {offsets = [32, 0], sizes = [1, 512], strides = [1, 1]} : vector<33x512xf32> to vector<1x512xf32>
    %9 = vector.extract_strided_slice %7 {offsets = [0, 0], sizes = [32, 512], strides = [1, 1]} : vector<33x512xf32> to vector<32x512xf32>
    %cst_7 = arith.constant 0.000000e+00 : f32
    %10 = vector.broadcast %cst_7 : f32 to vector<32x512xf32>
    %11 = arith.maximumf %9, %10 : vector<32x512xf32>
    %c1 = arith.constant 1 : index
    %c0_8 = arith.constant 0 : index
    %c0_9 = arith.constant 0 : index
    %12 = vector.load %arg2[%c1, %c0_8, %c0_9] : memref<8x33x32xf32, #tpu.memory_space<vmem>>, vector<1x33x32xf32>
    %13 = vector.shape_cast %12 : vector<1x33x32xf32> to vector<33x32xf32>
    %cst_10 = arith.constant dense<0.000000e+00> : vector<33x512xf32>
    %14 = tpu.matmul %13, %11, %cst_10 {dimension_numbers = #tpu.dot_dimension_numbers<[1], [0], [0], [1], [0, 0, 1, 1], [], []>} : vector<33x32xf32>, vector<32x512xf32>, vector<33x512xf32> -> vector<33x512xf32>
    %c1_11 = arith.constant 1 : index
    %c0_12 = arith.constant 0 : index
    %c0_13 = arith.constant 0 : index
    %15 = vector.load %arg3[%c1_11, %c0_12, %c0_13] : memref<8x33x1xf32, #tpu.memory_space<vmem>>, vector<1x33x1xf32>
    %16 = vector.shape_cast %15 : vector<1x33x1xf32> to vector<33x1xf32>
    %17 = vector.broadcast %16 : vector<33x1xf32> to vector<33x512xf32>
    %18 = arith.addf %14, %17 : vector<33x512xf32>
    %19 = vector.extract_strided_slice %18 {offsets = [32, 0], sizes = [1, 512], strides = [1, 1]} : vector<33x512xf32> to vector<1x512xf32>
    %20 = vector.extract_strided_slice %18 {offsets = [0, 0], sizes = [32, 512], strides = [1, 1]} : vector<33x512xf32> to vector<32x512xf32>
    %cst_14 = arith.constant 0.000000e+00 : f32
    %21 = vector.broadcast %cst_14 : f32 to vector<32x512xf32>
    %22 = arith.maximumf %20, %21 : vector<32x512xf32>
    %c2 = arith.constant 2 : index
    %c0_15 = arith.constant 0 : index
    %c0_16 = arith.constant 0 : index
    %23 = vector.load %arg2[%c2, %c0_15, %c0_16] : memref<8x33x32xf32, #tpu.memory_space<vmem>>, vector<1x33x32xf32>
    %24 = vector.shape_cast %23 : vector<1x33x32xf32> to vector<33x32xf32>
    %cst_17 = arith.constant dense<0.000000e+00> : vector<33x512xf32>
    %25 = tpu.matmul %24, %22, %cst_17 {dimension_numbers = #tpu.dot_dimension_numbers<[1], [0], [0], [1], [0, 0, 1, 1], [], []>} : vector<33x32xf32>, vector<32x512xf32>, vector<33x512xf32> -> vector<33x512xf32>
    %c2_18 = arith.constant 2 : index
    %c0_19 = arith.constant 0 : index
    %c0_20 = arith.constant 0 : index
    %26 = vector.load %arg3[%c2_18, %c0_19, %c0_20] : memref<8x33x1xf32, #tpu.memory_space<vmem>>, vector<1x33x1xf32>
    %27 = vector.shape_cast %26 : vector<1x33x1xf32> to vector<33x1xf32>
    %28 = vector.broadcast %27 : vector<33x1xf32> to vector<33x512xf32>
    %29 = arith.addf %25, %28 : vector<33x512xf32>
    %30 = vector.extract_strided_slice %29 {offsets = [32, 0], sizes = [1, 512], strides = [1, 1]} : vector<33x512xf32> to vector<1x512xf32>
    %31 = vector.extract_strided_slice %29 {offsets = [0, 0], sizes = [32, 512], strides = [1, 1]} : vector<33x512xf32> to vector<32x512xf32>
    %cst_21 = arith.constant 0.000000e+00 : f32
    %32 = vector.broadcast %cst_21 : f32 to vector<32x512xf32>
    %33 = arith.maximumf %31, %32 : vector<32x512xf32>
    %c3 = arith.constant 3 : index
    %c0_22 = arith.constant 0 : index
    %c0_23 = arith.constant 0 : index
    %34 = vector.load %arg2[%c3, %c0_22, %c0_23] : memref<8x33x32xf32, #tpu.memory_space<vmem>>, vector<1x33x32xf32>
    %35 = vector.shape_cast %34 : vector<1x33x32xf32> to vector<33x32xf32>
    %cst_24 = arith.constant dense<0.000000e+00> : vector<33x512xf32>
    %36 = tpu.matmul %35, %33, %cst_24 {dimension_numbers = #tpu.dot_dimension_numbers<[1], [0], [0], [1], [0, 0, 1, 1], [], []>} : vector<33x32xf32>, vector<32x512xf32>, vector<33x512xf32> -> vector<33x512xf32>
    %c3_25 = arith.constant 3 : index
    %c0_26 = arith.constant 0 : index
    %c0_27 = arith.constant 0 : index
    %37 = vector.load %arg3[%c3_25, %c0_26, %c0_27] : memref<8x33x1xf32, #tpu.memory_space<vmem>>, vector<1x33x1xf32>
    %38 = vector.shape_cast %37 : vector<1x33x1xf32> to vector<33x1xf32>
    %39 = vector.broadcast %38 : vector<33x1xf32> to vector<33x512xf32>
    %40 = arith.addf %36, %39 : vector<33x512xf32>
    %41 = vector.extract_strided_slice %40 {offsets = [32, 0], sizes = [1, 512], strides = [1, 1]} : vector<33x512xf32> to vector<1x512xf32>
    %42 = vector.extract_strided_slice %40 {offsets = [0, 0], sizes = [32, 512], strides = [1, 1]} : vector<33x512xf32> to vector<32x512xf32>
    %cst_28 = arith.constant 0.000000e+00 : f32
    %43 = vector.broadcast %cst_28 : f32 to vector<32x512xf32>
    %44 = arith.maximumf %42, %43 : vector<32x512xf32>
    %c4 = arith.constant 4 : index
    %c0_29 = arith.constant 0 : index
    %c0_30 = arith.constant 0 : index
    %45 = vector.load %arg2[%c4, %c0_29, %c0_30] : memref<8x33x32xf32, #tpu.memory_space<vmem>>, vector<1x33x32xf32>
    %46 = vector.shape_cast %45 : vector<1x33x32xf32> to vector<33x32xf32>
    %cst_31 = arith.constant dense<0.000000e+00> : vector<33x512xf32>
    %47 = tpu.matmul %46, %44, %cst_31 {dimension_numbers = #tpu.dot_dimension_numbers<[1], [0], [0], [1], [0, 0, 1, 1], [], []>} : vector<33x32xf32>, vector<32x512xf32>, vector<33x512xf32> -> vector<33x512xf32>
    %c4_32 = arith.constant 4 : index
    %c0_33 = arith.constant 0 : index
    %c0_34 = arith.constant 0 : index
    %48 = vector.load %arg3[%c4_32, %c0_33, %c0_34] : memref<8x33x1xf32, #tpu.memory_space<vmem>>, vector<1x33x1xf32>
    %49 = vector.shape_cast %48 : vector<1x33x1xf32> to vector<33x1xf32>
    %50 = vector.broadcast %49 : vector<33x1xf32> to vector<33x512xf32>
    %51 = arith.addf %47, %50 : vector<33x512xf32>
    %52 = vector.extract_strided_slice %51 {offsets = [32, 0], sizes = [1, 512], strides = [1, 1]} : vector<33x512xf32> to vector<1x512xf32>
    %53 = vector.extract_strided_slice %51 {offsets = [0, 0], sizes = [32, 512], strides = [1, 1]} : vector<33x512xf32> to vector<32x512xf32>
    %cst_35 = arith.constant 0.000000e+00 : f32
    %54 = vector.broadcast %cst_35 : f32 to vector<32x512xf32>
    %55 = arith.maximumf %53, %54 : vector<32x512xf32>
    %c5 = arith.constant 5 : index
    %c0_36 = arith.constant 0 : index
    %c0_37 = arith.constant 0 : index
    %56 = vector.load %arg2[%c5, %c0_36, %c0_37] : memref<8x33x32xf32, #tpu.memory_space<vmem>>, vector<1x33x32xf32>
    %57 = vector.shape_cast %56 : vector<1x33x32xf32> to vector<33x32xf32>
    %cst_38 = arith.constant dense<0.000000e+00> : vector<33x512xf32>
    %58 = tpu.matmul %57, %55, %cst_38 {dimension_numbers = #tpu.dot_dimension_numbers<[1], [0], [0], [1], [0, 0, 1, 1], [], []>} : vector<33x32xf32>, vector<32x512xf32>, vector<33x512xf32> -> vector<33x512xf32>
    %c5_39 = arith.constant 5 : index
    %c0_40 = arith.constant 0 : index
    %c0_41 = arith.constant 0 : index
    %59 = vector.load %arg3[%c5_39, %c0_40, %c0_41] : memref<8x33x1xf32, #tpu.memory_space<vmem>>, vector<1x33x1xf32>
    %60 = vector.shape_cast %59 : vector<1x33x1xf32> to vector<33x1xf32>
    %61 = vector.broadcast %60 : vector<33x1xf32> to vector<33x512xf32>
    %62 = arith.addf %58, %61 : vector<33x512xf32>
    %63 = vector.extract_strided_slice %62 {offsets = [32, 0], sizes = [1, 512], strides = [1, 1]} : vector<33x512xf32> to vector<1x512xf32>
    %64 = vector.extract_strided_slice %62 {offsets = [0, 0], sizes = [32, 512], strides = [1, 1]} : vector<33x512xf32> to vector<32x512xf32>
    %cst_42 = arith.constant 0.000000e+00 : f32
    %65 = vector.broadcast %cst_42 : f32 to vector<32x512xf32>
    %66 = arith.maximumf %64, %65 : vector<32x512xf32>
    %c6 = arith.constant 6 : index
    %c0_43 = arith.constant 0 : index
    %c0_44 = arith.constant 0 : index
    %67 = vector.load %arg2[%c6, %c0_43, %c0_44] : memref<8x33x32xf32, #tpu.memory_space<vmem>>, vector<1x33x32xf32>
    %68 = vector.shape_cast %67 : vector<1x33x32xf32> to vector<33x32xf32>
    %cst_45 = arith.constant dense<0.000000e+00> : vector<33x512xf32>
    %69 = tpu.matmul %68, %66, %cst_45 {dimension_numbers = #tpu.dot_dimension_numbers<[1], [0], [0], [1], [0, 0, 1, 1], [], []>} : vector<33x32xf32>, vector<32x512xf32>, vector<33x512xf32> -> vector<33x512xf32>
    %c6_46 = arith.constant 6 : index
    %c0_47 = arith.constant 0 : index
    %c0_48 = arith.constant 0 : index
    %70 = vector.load %arg3[%c6_46, %c0_47, %c0_48] : memref<8x33x1xf32, #tpu.memory_space<vmem>>, vector<1x33x1xf32>
    %71 = vector.shape_cast %70 : vector<1x33x1xf32> to vector<33x1xf32>
    %72 = vector.broadcast %71 : vector<33x1xf32> to vector<33x512xf32>
    %73 = arith.addf %69, %72 : vector<33x512xf32>
    %74 = vector.extract_strided_slice %73 {offsets = [32, 0], sizes = [1, 512], strides = [1, 1]} : vector<33x512xf32> to vector<1x512xf32>
    %75 = vector.extract_strided_slice %73 {offsets = [0, 0], sizes = [32, 512], strides = [1, 1]} : vector<33x512xf32> to vector<32x512xf32>
    %cst_49 = arith.constant 0.000000e+00 : f32
    %76 = vector.broadcast %cst_49 : f32 to vector<32x512xf32>
    %77 = arith.maximumf %75, %76 : vector<32x512xf32>
    %c7 = arith.constant 7 : index
    %c0_50 = arith.constant 0 : index
    %c0_51 = arith.constant 0 : index
    %78 = vector.load %arg2[%c7, %c0_50, %c0_51] : memref<8x33x32xf32, #tpu.memory_space<vmem>>, vector<1x33x32xf32>
    %79 = vector.shape_cast %78 : vector<1x33x32xf32> to vector<33x32xf32>
    %cst_52 = arith.constant dense<0.000000e+00> : vector<33x512xf32>
    %80 = tpu.matmul %79, %77, %cst_52 {dimension_numbers = #tpu.dot_dimension_numbers<[1], [0], [0], [1], [0, 0, 1, 1], [], []>} : vector<33x32xf32>, vector<32x512xf32>, vector<33x512xf32> -> vector<33x512xf32>
    %c7_53 = arith.constant 7 : index
    %c0_54 = arith.constant 0 : index
    %c0_55 = arith.constant 0 : index
    %81 = vector.load %arg3[%c7_53, %c0_54, %c0_55] : memref<8x33x1xf32, #tpu.memory_space<vmem>>, vector<1x33x1xf32>
    %82 = vector.shape_cast %81 : vector<1x33x1xf32> to vector<33x1xf32>
    %83 = vector.broadcast %82 : vector<33x1xf32> to vector<33x512xf32>
    %84 = arith.addf %80, %83 : vector<33x512xf32>
    %85 = vector.extract_strided_slice %84 {offsets = [32, 0], sizes = [1, 512], strides = [1, 1]} : vector<33x512xf32> to vector<1x512xf32>
    %86 = tpu.concatenate %8, %19, %30, %41, %52, %63, %74, %85 in 0 : vector<1x512xf32>, vector<1x512xf32>, vector<1x512xf32>, vector<1x512xf32>, vector<1x512xf32>, vector<1x512xf32>, vector<1x512xf32>, vector<1x512xf32> -> vector<8x512xf32>
    %c0_56 = arith.constant 0 : index
    %c0_57 = arith.constant 0 : index
    %87 = vector.load %arg4[%c0_56, %c0_57] : memref<8x512xf32, #tpu.memory_space<vmem>>, vector<8x512xf32>
    tpu.vector_store %arg4[%c0_56, %c0_57], %86 {strides = array<i32>} : memref<8x512xf32, #tpu.memory_space<vmem>>, vector<8x512xf32>,
    return
  }
  func.func @transform_0(%arg0: i32) -> (i32, i32) {
    %c0_i32 = arith.constant 0 : i32
    %c0_i32_0 = arith.constant 0 : i32
    return %c0_i32, %arg0 : i32, i32
  }
  func.func @transform_1(%arg0: i32) -> (i32, i32, i32) {
    %c0_i32 = arith.constant 0 : i32
    %c0_i32_0 = arith.constant 0 : i32
    %c0_i32_1 = arith.constant 0 : i32
    %c0_i32_2 = arith.constant 0 : i32
    return %c0_i32, %c0_i32_0, %c0_i32_1 : i32, i32, i32
  }
  func.func @transform_2(%arg0: i32) -> (i32, i32, i32) {
    %c0_i32 = arith.constant 0 : i32
    %c0_i32_0 = arith.constant 0 : i32
    %c0_i32_1 = arith.constant 0 : i32
    %c0_i32_2 = arith.constant 0 : i32
    return %c0_i32, %c0_i32_0, %c0_i32_1 : i32, i32, i32
  }
  func.func @transform_3(%arg0: i32) -> (i32, i32) {
    %c0_i32 = arith.constant 0 : i32
    %c0_i32_0 = arith.constant 0 : i32
    return %c0_i32, %arg0 : i32, i32
  }
}

</mosaic_0001>

<bundles_post_ra>
// kernel: tpu_custom_call.1
= control target key start
LH: loop header
LB: loop body
LE: loop exit
PB: predicated region body
PF: predicated region fallthrough
CT: control target
= control target key end

     0   :  { %v2502_v7 = vmov 0.0   ;;  %v2503_v13 = vmov 0   ;;  %vm66_vm0 = vcmask 261120   ;;  %s3187_s0 = inlined_call_operand.vmem [shape: f32[32,512], index: 0, kind: input, shape index: {}]   ;;  %s3188_s1 = inlined_call_operand.vmem [shape: f32[8,33,32], index: 1, kind: input, shape index: {}]   ;;  %s3189_s2 = inlined_call_operand.vmem [shape: f32[8,33,1], index: 2, kind: input, shape index: {}]   ;;  %s3190_s3 = inlined_call_operand.hbm [shape: f32[8,512], index: 3, kind: output, shape index: {}]  }
   0x1   :  { %v16_v0 = vld [vmem:[%s3187_s0 + $0x8] sm:$0xff]  ;;  %v18_v2 = vld [vmem:[%s3187_s0 + $0x18] sm:$0xff]  ;;  %v15_v5 = vld [vmem:[%s3187_s0] sm:$0xff]  ;;  %146 = vmatprep.mubr.f32.mxu0 %v2502_v7  ;;  %241 = vmatprep.mubr.f32.mxu1 %v2502_v7 }
   0x2   :  { %v20_v1 = vld [vmem:[%s3187_s0 + $0x28] sm:$0xff]  ;;  %v22_v4 = vld [vmem:[%s3187_s0 + $0x38] sm:$0xff]  ;;  %v19_v6 = vld [vmem:[%s3187_s0 + $0x20] sm:$0xff]  ;;  %2476 = vset.pattern.permute.xlu0 %v2503_v13  ;;  %2477 = vset.pattern.permute.xlu1 %v2503_v13 }
   0x3   :  { %v2345_v3 = vpack.c.bf16 %v20_v1, %v16_v0  ;;  %v2353_v8 = vpack.c.bf16 %v22_v4, %v18_v2  ;;  %v2347_v9 = vpack.c.bf16 %v19_v6, %v15_v5  ;;  %v17_v10 = vld [vmem:[%s3187_s0 + $0x10] sm:$0xff]  ;;  %v24_v12 = vld [vmem:[%s3187_s0 + $0x48] sm:$0xff]  ;;  %v26_v16 = vld [vmem:[%s3187_s0 + $0x58] sm:$0xff] }
   0x4   :  { %v21_v11 = vld [vmem:[%s3187_s0 + $0x30] sm:$0xff]  ;;  %v28_v15 = vld [vmem:[%s3187_s0 + $0x68] sm:$0xff]  ;;  %v30_v17 = vld [vmem:[%s3187_s0 + $0x78] sm:$0xff] }
   0x5   :  { %2346 = vmatprep.subr.bf16.mxu0 %v2345_v3  ;;  %v2355_v14 = vpack.c.bf16 %v21_v11, %v17_v10  ;;  %2354 = vmatprep.subr.bf16.mxu1 %v2353_v8  ;;  %v2349_v18 = vpack.c.bf16 %v28_v15, %v24_v12  ;;  %v2357_v19 = vpack.c.bf16 %v30_v17, %v26_v16  ;;  %v23_v20 = vld [vmem:[%s3187_s0 + $0x40] sm:$0xff]  ;;  %v25_v22 = vld [vmem:[%s3187_s0 + $0x50] sm:$0xff]  ;;  %v37_v29 = vld [vmem:[%s3189_s2 + $0x8] sm:$0xff] }
   0x6   :  { %2348 = vmatpush1.bf16.msra.mxu0 %v2347_v9  ;;  %v27_v21 = vld [vmem:[%s3187_s0 + $0x60] sm:$0xff]  ;;  %v29_v24 = vld [vmem:[%s3187_s0 + $0x70] sm:$0xff]  ;;  %v39_v30 = vld [vmem:[%s3189_s2 + $0x18] sm:$0xff] }
   0x7   :  { %2356 = vmatpush1.bf16.msra.mxu1 %v2355_v14  ;;  %v2351_v23 = vpack.c.bf16 %v27_v21, %v23_v20  ;;  %2350 = vmatprep.subr.bf16.mxu0 %v2349_v18  ;;  %v2359_v25 = vpack.c.bf16 %v29_v24, %v25_v22  ;;  %v36_v26 = vld [vmem:[%s3189_s2] sm:$0xff]  ;;  %v38_v27 = vld [vmem:[%s3189_s2 + $0x10] sm:$0xff]  ;;  %v32_v31 = vld [vmem:[%s3188_s1 + $0x8] sm:$0xff] }
   0x8   :  { %2358 = vmatprep.subr.bf16.mxu1 %v2357_v19  ;;  %v31_v28 = vld [vmem:[%s3188_s1] sm:$0xff]  ;;  %43 = vperm.xlu0 %2476, %v36_v26   ;;  %v2210_v32 = vld [vmem:[%s3189_s2 + $0x28] sm:$0xff]  ;;  %v2211_v33 = vld [vmem:[%s3189_s2 + $0x30] sm:$0xff] }
   0x9   :  { %53 = vperm.xlu1 %2477, %v38_v27   ;;  %v33_v34 = vld [vmem:[%s3188_s1 + $0x10] sm:$0xff]  ;;  %v2212_v35 = vld [vmem:[%s3189_s2 + $0x38] sm:$0xff]  ;;  %v2213_v36 = vld [vmem:[%s3189_s2 + $0x40] sm:$0xff] }
   0xa   :  { %2352 = vmatpush1.bf16.msra.mxu0 %v2351_v23 }
   0xb   :  { %2360 = vmatpush1.bf16.msra.mxu1 %v2359_v25 }
   0xc   :  { %48 = vperm.xlu0 %2476, %v37_v29  }
   0xd   :  { %2195 = vmatmul.mubr.msk.f32.vlgmr.msra.gmra.mrb[0].mxu0 %vm66_vm0, %v31_v28  ;;  %58 = vperm.xlu1 %2477, %v39_v30  }
   0xe   :  { %2200 = vmatmul.mubr.msk.f32.vlgmr.msra.gmra.mrb[0].mxu1 %vm66_vm0, %v31_v28  ;;  %152 = vmatprep.mubr.f32.mxu0 %v2502_v7 }
   0xf   :  { %247 = vmatprep.mubr.f32.mxu1 %v2502_v7 }
  0x10   :  { %302 = vperm.xlu0 %2476, %v2210_v32  }
  0x11   :  { %2196 = vmatmul.mubr.msk.f32.gmra.mrb[2].mxu0 %vm66_vm0, %v32_v31  ;;  %307 = vperm.xlu1 %2477, %v2211_v33  }
  0x12   :  { %2201 = vmatmul.mubr.msk.f32.gmra.mrb[2].mxu1 %vm66_vm0, %v32_v31  ;;  %158 = vmatprep.mubr.f32.mxu0 %v2502_v7 }
  0x13   :  { %253 = vmatprep.mubr.f32.mxu1 %v2502_v7 }
  0x15   :  { %2197 = vmatmul.mubr.msk.f32.gmra.mrb[4].mxu0 %vm66_vm0, %v33_v34 }
  0x16   :  { %8 = vsyncpa [#allocation3], 0  ;;  %2202 = vmatmul.mubr.msk.f32.gmra.mrb[4].mxu1 %vm66_vm0, %v33_v34  ;;  %164 = vmatprep.mubr.f32.mxu0 %v2502_v7  ;;  %v34_v37 = vld [vmem:[%s3188_s1 + $0x18] sm:$0xff]  ;;  %v2230_v38 = vld [vmem:[%s3189_s2 + $0x50] sm:$0xff]  ;;  %vm2142_vm1 = vcmask 1040384   ;;  %vm2147_vm2 = vcmask 1041408  }
  0x17   :  { %259 = vmatprep.mubr.f32.mxu1 %v2502_v7  ;;  %312 = vperm.xlu0 %2476, %v2212_v35   ;;  %v2231_v39 = vld [vmem:[%s3189_s2 + $0x58] sm:$0xff]  ;;  %v35_v40 = vld [vmem:[%s3188_s1 + $0x20] sm:$0x1]  ;;  %v2233_v42 = vld [vmem:[%s3189_s2 + $0x68] sm:$0xff]  ;;  %vm2152_vm3 = vcmask 1042432   ;;  %vm2157_vm4 = vcmask 1043456  }
  0x18   :  { %317 = vperm.xlu1 %2477, %v2213_v36   ;;  %v2232_v41 = vld [vmem:[%s3189_s2 + $0x60] sm:$0xff]  ;;  %v2250_v43 = vld [vmem:[%s3189_s2 + $0x78] sm:$0xff]  ;;  %v2252_v45 = vld [vmem:[%s3189_s2 + $0x88] sm:$0xff]  ;;  %vm2162_vm5 = vcmask 1044480   ;;  %vm2167_vm6 = vcmask 1045504   ;;  %vm2172_vm7 = vcmask 1046528  }
  0x19   :  { %2198 = vmatmul.mubr.msk.f32.gmra.mrb[6].mxu0 %vm66_vm0, %v34_v37  ;;  %v2251_v44 = vld [vmem:[%s3189_s2 + $0x80] sm:$0xff]  ;;  %v2253_v46 = vld [vmem:[%s3189_s2 + $0x90] sm:$0xff]  ;;  %v2271_v48 = vld [vmem:[%s3189_s2 + $0xa8] sm:$0xff] }
  0x1a   :  { %2203 = vmatmul.mubr.msk.f32.gmra.mrb[6].mxu1 %vm66_vm0, %v34_v37  ;;  %170 = vmatprep.mubr.f32.mxu0 %v2502_v7  ;;  %v2270_v47 = vld [vmem:[%s3189_s2 + $0xa0] sm:$0xff]  ;;  %v2272_v49 = vld [vmem:[%s3189_s2 + $0xb0] sm:$0xff]  ;;  %v2273_v50 = vld [vmem:[%s3189_s2 + $0xb8] sm:$0xff] }
  0x1b   :  { %265 = vmatprep.mubr.f32.mxu1 %v2502_v7  ;;  %560 = vperm.xlu0 %2476, %v2230_v38   ;;  %v2290_v51 = vld [vmem:[%s3189_s2 + $0xc8] sm:$0xff]  ;;  %v2291_v52 = vld [vmem:[%s3189_s2 + $0xd0] sm:$0xff]  ;;  %v2292_v53 = vld [vmem:[%s3189_s2 + $0xd8] sm:$0xff] }
  0x1c   :  { %565 = vperm.xlu1 %2477, %v2231_v39   ;;  %v2293_v54 = vld [vmem:[%s3189_s2 + $0xe0] sm:$0xff]  ;;  %v2310_v55 = vld [vmem:[%s3189_s2 + $0xf0] sm:$0xff]  ;;  %v2311_v56 = vld [vmem:[%s3189_s2 + $0xf8] sm:$0xff] }
  0x1d   :  { %2199 = vmatmul.mubr.msk.f32.gmra.mrb[8].mxu0 %vm66_vm0, %v35_v40  ;;  %v2312_v57 = vld [vmem:[%s3189_s2 + $0x100] sm:$0xff]  ;;  %v2313_v58 = vld [vmem:[%s3189_s2 + $0x108] sm:$0xff]  ;;  %v2234_v60 = vld [vmem:[%s3189_s2 + $0x70] sm:$0x1] }
  0x1e   :  { %2204 = vmatmul.mubr.msk.f32.gmra.mrb[8].mxu1 %vm66_vm0, %v35_v40  ;;  %404 = vmatprep.mubr.f32.mxu0 %v2502_v7  ;;  %v2214_v59 = vld [vmem:[%s3189_s2 + $0x48] sm:$0x1]  ;;  %v40_v61 = vld [vmem:[%s3189_s2 + $0x20] sm:$0x1]  ;;  %v2254_v62 = vld [vmem:[%s3189_s2 + $0x98] sm:$0x1] }
  0x1f   :  { %570 = vperm.xlu0 %2476, %v2232_v41   ;;  %499 = vmatprep.mubr.f32.mxu1 %v2502_v7  ;;  %v2274_v63 = vld [vmem:[%s3189_s2 + $0xc0] sm:$0x1]  ;;  %v2294_v0 = vld [vmem:[%s3189_s2 + $0xe8] sm:$0x1]  ;;  %v2314_v1 = vld [vmem:[%s3189_s2 + $0x110] sm:$0x1] }
  0x20   :  { %575 = vperm.xlu1 %2477, %v2233_v42   ;;  %v2334_v2 = vld [vmem:[%s3189_s2 + $0x138] sm:$0x1] }
  0x23   :  { %818 = vperm.xlu0 %2476, %v2250_v43  }
  0x24   :  { %823 = vperm.xlu1 %2477, %v2251_v44  }
  0x27   :  { %828 = vperm.xlu0 %2476, %v2252_v45  }
  0x28   :  { %833 = vperm.xlu1 %2477, %v2253_v46  }
  0x2b   :  { %1076 = vperm.xlu0 %2476, %v2270_v47  }
  0x2c   :  { %1081 = vperm.xlu1 %2477, %v2271_v48  }
  0x2f   :  { %1086 = vperm.xlu0 %2476, %v2272_v49  }
  0x30   :  { %1091 = vperm.xlu1 %2477, %v2273_v50  }
  0x33   :  { %1334 = vperm.xlu0 %2476, %v2290_v51  }
  0x34   :  { %1339 = vperm.xlu1 %2477, %v2291_v52  }
  0x37   :  { %1344 = vperm.xlu0 %2476, %v2292_v53  }
  0x38   :  { %1349 = vperm.xlu1 %2477, %v2293_v54  }
  0x3b   :  { %1592 = vperm.xlu0 %2476, %v2310_v55  }
  0x3c   :  { %1597 = vperm.xlu1 %2477, %v2311_v56  }
  0x3f   :  { %1602 = vperm.xlu0 %2476, %v2312_v57  }
  0x40   :  { %1607 = vperm.xlu1 %2477, %v2313_v58  }
  0x43   :  { %322 = vperm.xlu0 %2476, %v2214_v59  }
  0x44   :  { %580 = vperm.xlu1 %2477, %v2234_v60  }
  0x47   :  { %63 = vperm.xlu0 %2476, %v40_v61  }
  0x48   :  { %838 = vperm.xlu1 %2477, %v2254_v62  }
  0x4b   :  { %1096 = vperm.xlu0 %2476, %v2274_v63  }
  0x4c   :  { %1354 = vperm.xlu1 %2477, %v2294_v0  }
  0x4f   :  { %1612 = vperm.xlu0 %2476, %v2314_v1  }
  0x50   :  { %1866 = vperm.xlu1 %2477, %v2334_v2  }
  0x87   :  { %v44_v3 = vpop.permute.xlu0 %43 }
  0x88   :  { %v54_v18 = vpop.permute.xlu1 %53 }
  0x8b   :  { %v49_v10 = vpop.permute.xlu0 %48 }
  0x8c   :  { %v59_v40 = vpop.permute.xlu1 %58 }
  0xe0   :  { %v148_v4 = vpop.f32.mrb[0].mxu0 }
  0xe1   :  { %v243_v5 = vpop.f32.mrb[0].mxu1  ;;  %v150_v6 = vpop.f32.mrb[1].mxu0  ;;  %v149_v9 = vadd.f32 %v148_v4, %v44_v3  ;;  %v2205_v4 = vld [vmem:[%s3188_s1 + $0x28] sm:$0xff] }
  0xe2   :  { %v245_v8 = vpop.f32.mrb[1].mxu1  ;;  %v244_v11 = vadd.f32 %v243_v5, %v44_v3  ;;  %v151_v12 = vadd.f32 %v150_v6, %v44_v3  ;;  %v2206_v5 = vld [vmem:[%s3188_s1 + $0x30] sm:$0xff]  ;;  %v2207_v6 = vld [vmem:[%s3188_s1 + $0x38] sm:$0xff] }
  0xe3   :  { %v246_v14 = vadd.f32 %v245_v8, %v44_v3  ;;  %v272_v22 = vmax.f32 %v149_v9, 0.0  ;;  %v2208_v8 = vld [vmem:[%s3188_s1 + $0x40] sm:$0xff]  ;;  %v2209_v9 = vld [vmem:[%s3188_s1 + $0x48] sm:$0x1] }
  0xe4   :  { %v154_v13 = vpop.f32.mrb[2].mxu0  ;;  %v274_v25 = vmax.f32 %v244_v11, 0.0  ;;  %v273_v26 = vmax.f32 %v151_v12, 0.0 }
  0xe5   :  { %v155_v15 = vadd.f32 %v154_v13, %v49_v10  ;;  %v249_v16 = vpop.f32.mrb[2].mxu1  ;;  %v156_v17 = vpop.f32.mrb[3].mxu0  ;;  %v275_v30 = vmax.f32 %v246_v14, 0.0 }
  0xe6   :  { %v250_v19 = vadd.f32 %v249_v16, %v49_v10  ;;  %v157_v20 = vadd.f32 %v156_v17, %v49_v10  ;;  %v251_v21 = vpop.f32.mrb[3].mxu1 }
  0xe7   :  { %v276_v23 = vmax.f32 %v155_v15, 0.0  ;;  %v252_v24 = vadd.f32 %v251_v21, %v49_v10  ;;  %v303_v10 = vpop.permute.xlu0 %302 }
  0xe8   :  { %v278_v27 = vmax.f32 %v250_v19, 0.0  ;;  %v277_v28 = vmax.f32 %v157_v20, 0.0  ;;  %v160_v29 = vpop.f32.mrb[4].mxu0 }
  0xe9   :  { %v2363_v31 = vpack.c.bf16 %v276_v23, %v272_v22  ;;  %v279_v32 = vmax.f32 %v252_v24, 0.0  ;;  %v255_v33 = vpop.f32.mrb[4].mxu1  ;;  %v162_v34 = vpop.f32.mrb[5].mxu0  ;;  %v161_v39 = vadd.f32 %v160_v29, %v54_v18 }
  0xea   :  { %v2371_v35 = vpack.c.bf16 %v278_v27, %v274_v25  ;;  %v2361_v36 = vpack.c.bf16 %v277_v28, %v273_v26  ;;  %v257_v37 = vpop.f32.mrb[5].mxu1  ;;  %v256_v41 = vadd.f32 %v255_v33, %v54_v18  ;;  %v163_v42 = vadd.f32 %v162_v34, %v54_v18  ;;  %v308_v26 = vpop.permute.xlu1 %307 }
  0xeb   :  { %v2369_v38 = vpack.c.bf16 %v279_v32, %v275_v30  ;;  %v258_v44 = vadd.f32 %v257_v37, %v54_v18  ;;  %v280_v51 = vmax.f32 %v161_v39, 0.0  ;;  %v313_v11 = vpop.permute.xlu0 %312 }
  0xec   :  { %v166_v43 = vpop.f32.mrb[6].mxu0  ;;  %2362 = vmatprep.subr.bf16.mxu0 %v2361_v36  ;;  %v282_v54 = vmax.f32 %v256_v41, 0.0  ;;  %v281_v55 = vmax.f32 %v163_v42, 0.0 }
  0xed   :  { %v167_v45 = vadd.f32 %v166_v43, %v59_v40  ;;  %v261_v46 = vpop.f32.mrb[6].mxu1  ;;  %2370 = vmatprep.subr.bf16.mxu1 %v2369_v38  ;;  %v168_v47 = vpop.f32.mrb[7].mxu0  ;;  %2364 = vmatpush1.bf16.msra.mxu0 %v2363_v31  ;;  %v283_v59 = vmax.f32 %v258_v44, 0.0 }
  0xee   :  { %v262_v48 = vadd.f32 %v261_v46, %v59_v40  ;;  %v169_v49 = vadd.f32 %v168_v47, %v59_v40  ;;  %v263_v50 = vpop.f32.mrb[7].mxu1  ;;  %2372 = vmatpush1.bf16.msra.mxu1 %v2371_v35 }
  0xef   :  { %v284_v52 = vmax.f32 %v167_v45, 0.0  ;;  %v264_v53 = vadd.f32 %v263_v50, %v59_v40  ;;  %v2761_v12 = vpop.permute.xlu0 %560 }
  0xf0   :  { %v286_v56 = vmax.f32 %v262_v48, 0.0  ;;  %v285_v57 = vmax.f32 %v169_v49, 0.0  ;;  %v2718_v58 = vpop.f32.mrb[8].mxu0 }
  0xf1   :  { %v2367_v60 = vpack.c.bf16 %v284_v52, %v280_v51  ;;  %v287_v61 = vmax.f32 %v264_v53, 0.0  ;;  %v2720_v62 = vpop.f32.mrb[8].mxu1  ;;  %v2722_v63 = vpop.f32.mrb[9].mxu0 }
  0xf2   :  { %v2375_v0 = vpack.c.bf16 %v286_v56, %v282_v54  ;;  %v2365_v1 = vpack.c.bf16 %v285_v57, %v281_v55  ;;  %v2724_v2 = vpop.f32.mrb[9].mxu1  ;;  %v318_v54 = vpop.permute.xlu1 %317 }
  0xf3   :  { %v2373_v3 = vpack.c.bf16 %v287_v61, %v283_v59  ;;  %v2763_v13 = vpop.permute.xlu0 %570 }
  0xf4   :  { %2366 = vmatprep.subr.bf16.mxu0 %v2365_v1 }
  0xf5   :  { %2374 = vmatprep.subr.bf16.mxu1 %v2373_v3  ;;  %2368 = vmatpush1.bf16.msra.mxu0 %v2367_v60 }
  0xf6   :  { %2376 = vmatpush1.bf16.msra.mxu1 %v2375_v0 }
  0xf7   :  { %v2765_v14 = vpop.permute.xlu0 %818 }
  0xf8   :  { %2215 = vmatmul.mubr.msk.f32.vlgmr.msra.gmra.mrb[10].mxu0 %vm66_vm0, %v2205_v4 }
  0xf9   :  { %2220 = vmatmul.mubr.msk.f32.vlgmr.msra.gmra.mrb[10].mxu1 %vm66_vm0, %v2205_v4  ;;  %410 = vmatprep.mubr.f32.mxu0 %v2502_v7 }
  0xfa   :  { %505 = vmatprep.mubr.f32.mxu1 %v2502_v7 }
  0xfb   :  { %v2767_v15 = vpop.permute.xlu0 %828 }
  0xfc   :  { %2216 = vmatmul.mubr.msk.f32.gmra.mrb[12].mxu0 %vm66_vm0, %v2206_v5 }
  0xfd   :  { %2221 = vmatmul.mubr.msk.f32.gmra.mrb[12].mxu1 %vm66_vm0, %v2206_v5  ;;  %416 = vmatprep.mubr.f32.mxu0 %v2502_v7 }
  0xfe   :  { %511 = vmatprep.mubr.f32.mxu1 %v2502_v7 }
  0xff   :  { %v2769_v16 = vpop.permute.xlu0 %1076 }
 0x100   :  { %2217 = vmatmul.mubr.msk.f32.gmra.mrb[14].mxu0 %vm66_vm0, %v2207_v6 }
 0x101   :  { %2222 = vmatmul.mubr.msk.f32.gmra.mrb[14].mxu1 %vm66_vm0, %v2207_v6  ;;  %422 = vmatprep.mubr.f32.mxu0 %v2502_v7 }
 0x102   :  { %517 = vmatprep.mubr.f32.mxu1 %v2502_v7 }
 0x103   :  { %v2771_v17 = vpop.permute.xlu0 %1086 }
 0x104   :  { %2218 = vmatmul.mubr.msk.f32.gmra.mrb[16].mxu0 %vm66_vm0, %v2208_v8 }
 0x105   :  { %2223 = vmatmul.mubr.msk.f32.gmra.mrb[16].mxu1 %vm66_vm0, %v2208_v8  ;;  %428 = vmatprep.mubr.f32.mxu0 %v2502_v7 }
 0x106   :  { %523 = vmatprep.mubr.f32.mxu1 %v2502_v7 }
 0x107   :  { %v2773_v18 = vpop.permute.xlu0 %1334 }
 0x108   :  { %2219 = vmatmul.mubr.msk.f32.gmra.mrb[18].mxu0 %vm66_vm0, %v2209_v9 }
 0x109   :  { %2224 = vmatmul.mubr.msk.f32.gmra.mrb[18].mxu1 %vm66_vm0, %v2209_v9  ;;  %662 = vmatprep.mubr.f32.mxu0 %v2502_v7 }
 0x10a   :  { %757 = vmatprep.mubr.f32.mxu1 %v2502_v7 }
 0x10b   :  { %v2775_v19 = vpop.permute.xlu0 %1344 }
 0x10f   :  { %v2777_v20 = vpop.permute.xlu0 %1592 }
 0x113   :  { %v2779_v34 = vpop.permute.xlu0 %1602 }
 0x117   :  { %v323_v57 = vpop.permute.xlu0 %322 }
 0x1cb   :  { %v406_v21 = vpop.f32.mrb[10].mxu0 }
 0x1cc   :  { %v501_v22 = vpop.f32.mrb[10].mxu1  ;;  %v408_v23 = vpop.f32.mrb[11].mxu0  ;;  %v407_v25 = vadd.f32 %v406_v21, %v303_v10 }
 0x1cd   :  { %v503_v24 = vpop.f32.mrb[11].mxu1  ;;  %v502_v27 = vadd.f32 %v501_v22, %v303_v10  ;;  %v409_v28 = vadd.f32 %v408_v23, %v303_v10 }
 0x1ce   :  { %v504_v30 = vadd.f32 %v503_v24, %v303_v10  ;;  %v530_v38 = vmax.f32 %v407_v25, 0.0 }
 0x1cf   :  { %v412_v29 = vpop.f32.mrb[12].mxu0  ;;  %v532_v41 = vmax.f32 %v502_v27, 0.0  ;;  %v531_v42 = vmax.f32 %v409_v28, 0.0 }
 0x1d0   :  { %v413_v31 = vadd.f32 %v412_v29, %v308_v26  ;;  %v507_v32 = vpop.f32.mrb[12].mxu1  ;;  %v414_v33 = vpop.f32.mrb[13].mxu0  ;;  %v533_v46 = vmax.f32 %v504_v30, 0.0 }
 0x1d1   :  { %v508_v35 = vadd.f32 %v507_v32, %v308_v26  ;;  %v415_v36 = vadd.f32 %v414_v33, %v308_v26  ;;  %v509_v37 = vpop.f32.mrb[13].mxu1  ;;  %v64_v32 = vpop.permute.xlu0 %63 }
 0x1d2   :  { %v534_v39 = vmax.f32 %v413_v31, 0.0  ;;  %v510_v40 = vadd.f32 %v509_v37, %v308_v26 }
 0x1d3   :  { %v536_v43 = vmax.f32 %v508_v35, 0.0  ;;  %v535_v44 = vmax.f32 %v415_v36, 0.0  ;;  %v418_v45 = vpop.f32.mrb[14].mxu0 }
 0x1d4   :  { %v2379_v47 = vpack.c.bf16 %v534_v39, %v530_v38  ;;  %v537_v48 = vmax.f32 %v510_v40, 0.0  ;;  %v513_v49 = vpop.f32.mrb[14].mxu1  ;;  %v420_v50 = vpop.f32.mrb[15].mxu0  ;;  %v419_v56 = vadd.f32 %v418_v45, %v313_v11  ;;  %v173_v39 = vadd.f32 %v2718_v58, %v64_v32  ;;  %v2225_v58 = vld [vmem:[%s3188_s1 + $0x50] sm:$0xff] }
 0x1d5   :  { %v2387_v51 = vpack.c.bf16 %v536_v43, %v532_v41  ;;  %v2377_v52 = vpack.c.bf16 %v535_v44, %v531_v42  ;;  %v515_v53 = vpop.f32.mrb[15].mxu1  ;;  %v514_v59 = vadd.f32 %v513_v49, %v313_v11  ;;  %v421_v60 = vadd.f32 %v420_v50, %v313_v11 }
 0x1d6   :  { %v2385_v55 = vpack.c.bf16 %v537_v48, %v533_v46  ;;  %v516_v0 = vadd.f32 %v515_v53, %v313_v11  ;;  %v538_v9 = vmax.f32 %v419_v56, 0.0  ;;  %v268_v43 = vadd.f32 %v2720_v62, %v64_v32  ;;  %v2229_v53 = vld [vmem:[%s3188_s1 + $0x70] sm:$0x1] }
 0x1d7   :  { %v424_v61 = vpop.f32.mrb[16].mxu0  ;;  %2378 = vmatprep.subr.bf16.mxu0 %v2377_v52  ;;  %v540_v22 = vmax.f32 %v514_v59, 0.0  ;;  %v539_v23 = vmax.f32 %v421_v60, 0.0  ;;  %v175_v44 = vadd.f32 %v2722_v63, %v64_v32  ;;  %v2228_v52 = vld [vmem:[%s3188_s1 + $0x68] sm:$0xff] }
 0x1d8   :  { %v425_v1 = vadd.f32 %v424_v61, %v318_v54  ;;  %v519_v3 = vpop.f32.mrb[16].mxu1  ;;  %2386 = vmatprep.subr.bf16.mxu1 %v2385_v55  ;;  %v426_v4 = vpop.f32.mrb[17].mxu0  ;;  %2380 = vmatpush1.bf16.msra.mxu0 %v2379_v47  ;;  %v541_v27 = vmax.f32 %v516_v0, 0.0  ;;  %v270_v47 = vadd.f32 %v2724_v2, %v64_v32  ;;  %v2226_v2 = vld [vmem:[%s3188_s1 + $0x58] sm:$0xff] }
 0x1d9   :  { %v520_v5 = vadd.f32 %v519_v3, %v318_v54  ;;  %v427_v6 = vadd.f32 %v426_v4, %v318_v54  ;;  %v521_v8 = vpop.f32.mrb[17].mxu1  ;;  %2388 = vmatpush1.bf16.msra.mxu1 %v2387_v51  ;;  %v2227_v51 = vld [vmem:[%s3188_s1 + $0x60] sm:$0xff] }
 0x1da   :  { %v542_v10 = vmax.f32 %v425_v1, 0.0  ;;  %v522_v21 = vadd.f32 %v521_v8, %v318_v54  ;;  %v566_v54 = vpop.permute.xlu1 %565 }
 0x1db   :  { %v544_v24 = vmax.f32 %v520_v5, 0.0  ;;  %v543_v25 = vmax.f32 %v427_v6, 0.0  ;;  %v430_v26 = vpop.f32.mrb[18].mxu0 }
 0x1dc   :  { %v2383_v11 = vpack.c.bf16 %v542_v10, %v538_v9  ;;  %v545_v28 = vmax.f32 %v522_v21, 0.0  ;;  %v431_v29 = vadd.f32 %v430_v26, %v323_v57  ;;  %v525_v30 = vpop.f32.mrb[18].mxu1  ;;  %v432_v31 = vpop.f32.mrb[19].mxu0 }
 0x1dd   :  { %v2391_v33 = vpack.c.bf16 %v544_v24, %v540_v22  ;;  %v2381_v35 = vpack.c.bf16 %v543_v25, %v539_v23  ;;  %v526_v36 = vadd.f32 %v525_v30, %v323_v57  ;;  %v433_v37 = vadd.f32 %v432_v31, %v323_v57  ;;  %v527_v38 = vpop.f32.mrb[19].mxu1 }
 0x1de   :  { %v2389_v40 = vpack.c.bf16 %v545_v28, %v541_v27  ;;  %v2062_v41 = vrot.slane %v431_v29, 7  ;;  %v528_v42 = vadd.f32 %v527_v38, %v323_v57  ;;  %v576_v55 = vpop.permute.xlu1 %575 }
 0x1df   :  { %v2064_v45 = vrot.slane %v526_v36, 7  ;;  %v2063_v46 = vrot.slane %v433_v37, 7  ;;  %2382 = vmatprep.subr.bf16.mxu0 %v2381_v35 }
 0x1e0   :  { %v2786_v48 = vsel %vm2142_vm1, %v173_v39, %v2062_v41  ;;  %v2065_v49 = vrot.slane %v528_v42, 7  ;;  %2390 = vmatprep.subr.bf16.mxu1 %v2389_v40  ;;  %2384 = vmatpush1.bf16.msra.mxu0 %v2383_v11 }
 0x1e1   :  { %v2792_v50 = vsel %vm2142_vm1, %v268_v43, %v2064_v45  ;;  %v2795_v62 = vsel %vm2142_vm1, %v175_v44, %v2063_v46  ;;  %2392 = vmatpush1.bf16.msra.mxu1 %v2391_v33 }
 0x1e2   :  { %v2798_v63 = vsel %vm2142_vm1, %v270_v47, %v2065_v49  ;;  %v2832_v56 = vpop.permute.xlu1 %823 }
 0x1e3   :  { %2235 = vmatmul.mubr.msk.f32.vlgmr.msra.gmra.mrb[20].mxu0 %vm66_vm0, %v2225_v58 }
 0x1e4   :  { %2240 = vmatmul.mubr.msk.f32.vlgmr.msra.gmra.mrb[20].mxu1 %vm66_vm0, %v2225_v58  ;;  %668 = vmatprep.mubr.f32.mxu0 %v2502_v7 }
 0x1e5   :  { %763 = vmatprep.mubr.f32.mxu1 %v2502_v7 }
 0x1e6   :  { %v2834_v57 = vpop.permute.xlu1 %833 }
 0x1e7   :  { %2236 = vmatmul.mubr.msk.f32.gmra.mrb[22].mxu0 %vm66_vm0, %v2226_v2 }
 0x1e8   :  { %2241 = vmatmul.mubr.msk.f32.gmra.mrb[22].mxu1 %vm66_vm0, %v2226_v2  ;;  %674 = vmatprep.mubr.f32.mxu0 %v2502_v7 }
 0x1e9   :  { %769 = vmatprep.mubr.f32.mxu1 %v2502_v7 }
 0x1ea   :  { %v2836_v59 = vpop.permute.xlu1 %1081 }
 0x1eb   :  { %2237 = vmatmul.mubr.msk.f32.gmra.mrb[24].mxu0 %vm66_vm0, %v2227_v51 }
 0x1ec   :  { %2242 = vmatmul.mubr.msk.f32.gmra.mrb[24].mxu1 %vm66_vm0, %v2227_v51  ;;  %680 = vmatprep.mubr.f32.mxu0 %v2502_v7 }
 0x1ed   :  { %775 = vmatprep.mubr.f32.mxu1 %v2502_v7 }
 0x1ee   :  { %v2838_v60 = vpop.permute.xlu1 %1091 }
 0x1ef   :  { %2238 = vmatmul.mubr.msk.f32.gmra.mrb[26].mxu0 %vm66_vm0, %v2228_v52 }
 0x1f0   :  { %2243 = vmatmul.mubr.msk.f32.gmra.mrb[26].mxu1 %vm66_vm0, %v2228_v52  ;;  %686 = vmatprep.mubr.f32.mxu0 %v2502_v7 }
 0x1f1   :  { %781 = vmatprep.mubr.f32.mxu1 %v2502_v7 }
 0x1f2   :  { %v2840_v61 = vpop.permute.xlu1 %1339 }
 0x1f3   :  { %2239 = vmatmul.mubr.msk.f32.gmra.mrb[28].mxu0 %vm66_vm0, %v2229_v53 }
 0x1f4   :  { %2244 = vmatmul.mubr.msk.f32.gmra.mrb[28].mxu1 %vm66_vm0, %v2229_v53  ;;  %920 = vmatprep.mubr.f32.mxu0 %v2502_v7 }
 0x1f5   :  { %1015 = vmatprep.mubr.f32.mxu1 %v2502_v7 }
 0x1f6   :  { %v2842_v0 = vpop.permute.xlu1 %1349 }
 0x1fa   :  { %v2845_v8 = vpop.permute.xlu1 %1597 }
 0x2b6   :  { %v664_v1 = vpop.f32.mrb[20].mxu0 }
 0x2b7   :  { %v759_v3 = vpop.f32.mrb[20].mxu1  ;;  %v666_v4 = vpop.f32.mrb[21].mxu0  ;;  %v665_v6 = vadd.f32 %v664_v1, %v2761_v12 }
 0x2b8   :  { %v761_v5 = vpop.f32.mrb[21].mxu1  ;;  %v760_v9 = vadd.f32 %v759_v3, %v2761_v12  ;;  %v667_v10 = vadd.f32 %v666_v4, %v2761_v12 }
 0x2b9   :  { %v762_v22 = vadd.f32 %v761_v5, %v2761_v12  ;;  %v788_v28 = vmax.f32 %v665_v6, 0.0  ;;  %v2850_v12 = vpop.permute.xlu1 %1607 }
 0x2ba   :  { %v670_v21 = vpop.f32.mrb[22].mxu0  ;;  %v790_v31 = vmax.f32 %v760_v9, 0.0  ;;  %v789_v32 = vmax.f32 %v667_v10, 0.0 }
 0x2bb   :  { %v671_v23 = vadd.f32 %v670_v21, %v566_v54  ;;  %v765_v24 = vpop.f32.mrb[22].mxu1  ;;  %v672_v25 = vpop.f32.mrb[23].mxu0  ;;  %v791_v37 = vmax.f32 %v762_v22, 0.0 }
 0x2bc   :  { %v766_v26 = vadd.f32 %v765_v24, %v566_v54  ;;  %v673_v27 = vadd.f32 %v672_v25, %v566_v54  ;;  %v767_v11 = vpop.f32.mrb[23].mxu1 }
 0x2bd   :  { %v792_v29 = vmax.f32 %v671_v23, 0.0  ;;  %v768_v30 = vadd.f32 %v767_v11, %v566_v54  ;;  %v581_v9 = vpop.permute.xlu1 %580 }
 0x2be   :  { %v794_v33 = vmax.f32 %v766_v26, 0.0  ;;  %v793_v35 = vmax.f32 %v673_v27, 0.0  ;;  %v676_v36 = vpop.f32.mrb[24].mxu0 }
 0x2bf   :  { %v2395_v38 = vpack.c.bf16 %v792_v29, %v788_v28  ;;  %v795_v39 = vmax.f32 %v768_v30, 0.0  ;;  %v771_v40 = vpop.f32.mrb[24].mxu1  ;;  %v678_v41 = vpop.f32.mrb[25].mxu0  ;;  %v677_v46 = vadd.f32 %v676_v36, %v2763_v13 }
 0x2c0   :  { %v2403_v42 = vpack.c.bf16 %v794_v33, %v790_v31  ;;  %v2393_v43 = vpack.c.bf16 %v793_v35, %v789_v32  ;;  %v773_v44 = vpop.f32.mrb[25].mxu1  ;;  %v772_v47 = vadd.f32 %v771_v40, %v2763_v13  ;;  %v679_v49 = vadd.f32 %v678_v41, %v2763_v13  ;;  %v2245_v41 = vld [vmem:[%s3188_s1 + $0x78] sm:$0xff] }
 0x2c1   :  { %v2401_v45 = vpack.c.bf16 %v795_v39, %v791_v37  ;;  %v774_v2 = vadd.f32 %v773_v44, %v2763_v13  ;;  %v796_v4 = vmax.f32 %v677_v46, 0.0  ;;  %v2249_v44 = vld [vmem:[%s3188_s1 + $0x98] sm:$0x1] }
 0x2c2   :  { %v682_v58 = vpop.f32.mrb[26].mxu0  ;;  %2394 = vmatprep.subr.bf16.mxu0 %v2393_v43  ;;  %v798_v10 = vmax.f32 %v772_v47, 0.0  ;;  %v797_v21 = vmax.f32 %v679_v49, 0.0 }
 0x2c3   :  { %v683_v51 = vadd.f32 %v682_v58, %v576_v55  ;;  %v777_v52 = vpop.f32.mrb[26].mxu1  ;;  %2402 = vmatprep.subr.bf16.mxu1 %v2401_v45  ;;  %v684_v53 = vpop.f32.mrb[27].mxu0  ;;  %2396 = vmatpush1.bf16.msra.mxu0 %v2395_v38  ;;  %v799_v13 = vmax.f32 %v774_v2, 0.0 }
 0x2c4   :  { %v778_v54 = vadd.f32 %v777_v52, %v576_v55  ;;  %v685_v1 = vadd.f32 %v684_v53, %v576_v55  ;;  %v779_v3 = vpop.f32.mrb[27].mxu1  ;;  %2404 = vmatpush1.bf16.msra.mxu1 %v2403_v42 }
 0x2c5   :  { %v800_v5 = vmax.f32 %v683_v51, 0.0  ;;  %v780_v6 = vadd.f32 %v779_v3, %v576_v55 }
 0x2c6   :  { %v802_v22 = vmax.f32 %v778_v54, 0.0  ;;  %v801_v23 = vmax.f32 %v685_v1, 0.0  ;;  %v688_v24 = vpop.f32.mrb[28].mxu0 }
 0x2c7   :  { %v2399_v25 = vpack.c.bf16 %v800_v5, %v796_v4  ;;  %v803_v26 = vmax.f32 %v780_v6, 0.0  ;;  %v689_v27 = vadd.f32 %v688_v24, %v581_v9  ;;  %v783_v11 = vpop.f32.mrb[28].mxu1  ;;  %v690_v28 = vpop.f32.mrb[29].mxu0 }
 0x2c8   :  { %v2407_v29 = vpack.c.bf16 %v802_v22, %v798_v10  ;;  %v2397_v30 = vpack.c.bf16 %v801_v23, %v797_v21  ;;  %v784_v31 = vadd.f32 %v783_v11, %v581_v9  ;;  %v691_v32 = vadd.f32 %v690_v28, %v581_v9  ;;  %v785_v33 = vpop.f32.mrb[29].mxu1 }
 0x2c9   :  { %v2405_v35 = vpack.c.bf16 %v803_v26, %v799_v13  ;;  %v2074_v55 = vrot.slane %v689_v27, 6  ;;  %v786_v36 = vadd.f32 %v785_v33, %v581_v9 }
 0x2ca   :  { %v2076_v37 = vrot.slane %v784_v31, 6  ;;  %v2075_v38 = vrot.slane %v691_v32, 6  ;;  %2398 = vmatprep.subr.bf16.mxu0 %v2397_v30 }
 0x2cb   :  { %v2858_v39 = vsel %vm2147_vm2, %v2786_v48, %v2074_v55  ;;  %v2077_v40 = vrot.slane %v786_v36, 6  ;;  %2406 = vmatprep.subr.bf16.mxu1 %v2405_v35  ;;  %2400 = vmatpush1.bf16.msra.mxu0 %v2399_v25 }
 0x2cc   :  { %v2865_v42 = vsel %vm2147_vm2, %v2792_v50, %v2076_v37  ;;  %v2869_v43 = vsel %vm2147_vm2, %v2795_v62, %v2075_v38  ;;  %2408 = vmatpush1.bf16.msra.mxu1 %v2407_v29  ;;  %v2246_v50 = vld [vmem:[%s3188_s1 + $0x80] sm:$0xff]  ;;  %v2247_v62 = vld [vmem:[%s3188_s1 + $0x88] sm:$0xff] }
 0x2cd   :  { %v2873_v48 = vsel %vm2147_vm2, %v2798_v63, %v2077_v40  ;;  %v2248_v63 = vld [vmem:[%s3188_s1 + $0x90] sm:$0xff] }
 0x2ce   :  { %2255 = vmatmul.mubr.msk.f32.vlgmr.msra.gmra.mrb[30].mxu0 %vm66_vm0, %v2245_v41 }
 0x2cf   :  { %2260 = vmatmul.mubr.msk.f32.vlgmr.msra.gmra.mrb[30].mxu1 %vm66_vm0, %v2245_v41  ;;  %926 = vmatprep.mubr.f32.mxu0 %v2502_v7 }
 0x2d0   :  { %1021 = vmatprep.mubr.f32.mxu1 %v2502_v7 }
 0x2d2   :  { %2256 = vmatmul.mubr.msk.f32.gmra.mrb[32].mxu0 %vm66_vm0, %v2246_v50 }
 0x2d3   :  { %2261 = vmatmul.mubr.msk.f32.gmra.mrb[32].mxu1 %vm66_vm0, %v2246_v50  ;;  %932 = vmatprep.mubr.f32.mxu0 %v2502_v7 }
 0x2d4   :  { %1027 = vmatprep.mubr.f32.mxu1 %v2502_v7 }
 0x2d6   :  { %2257 = vmatmul.mubr.msk.f32.gmra.mrb[34].mxu0 %vm66_vm0, %v2247_v62 }
 0x2d7   :  { %2262 = vmatmul.mubr.msk.f32.gmra.mrb[34].mxu1 %vm66_vm0, %v2247_v62  ;;  %938 = vmatprep.mubr.f32.mxu0 %v2502_v7 }
 0x2d8   :  { %1033 = vmatprep.mubr.f32.mxu1 %v2502_v7 }
 0x2da   :  { %2258 = vmatmul.mubr.msk.f32.gmra.mrb[36].mxu0 %vm66_vm0, %v2248_v63 }
 0x2db   :  { %2263 = vmatmul.mubr.msk.f32.gmra.mrb[36].mxu1 %vm66_vm0, %v2248_v63  ;;  %944 = vmatprep.mubr.f32.mxu0 %v2502_v7 }
 0x2dc   :  { %1039 = vmatprep.mubr.f32.mxu1 %v2502_v7 }
 0x2de   :  { %2259 = vmatmul.mubr.msk.f32.gmra.mrb[38].mxu0 %vm66_vm0, %v2249_v44 }
 0x2df   :  { %2264 = vmatmul.mubr.msk.f32.gmra.mrb[38].mxu1 %vm66_vm0, %v2249_v44  ;;  %1178 = vmatprep.mubr.f32.mxu0 %v2502_v7 }
 0x2e0   :  { %1273 = vmatprep.mubr.f32.mxu1 %v2502_v7 }
 0x3a1   :  { %v922_v45 = vpop.f32.mrb[30].mxu0 }
 0x3a2   :  { %v1017_v46 = vpop.f32.mrb[30].mxu1  ;;  %v924_v47 = vpop.f32.mrb[31].mxu0  ;;  %v923_v58 = vadd.f32 %v922_v45, %v2765_v14 }
 0x3a3   :  { %v1019_v49 = vpop.f32.mrb[31].mxu1  ;;  %v1018_v2 = vadd.f32 %v1017_v46, %v2765_v14  ;;  %v925_v51 = vadd.f32 %v924_v47, %v2765_v14  ;;  %v839_v46 = vpop.permute.xlu1 %838 }
 0x3a4   :  { %v1020_v53 = vadd.f32 %v1019_v49, %v2765_v14  ;;  %v1046_v9 = vmax.f32 %v923_v58, 0.0 }
 0x3a5   :  { %v928_v52 = vpop.f32.mrb[32].mxu0  ;;  %v1048_v22 = vmax.f32 %v1018_v2, 0.0  ;;  %v1047_v23 = vmax.f32 %v925_v51, 0.0 }
 0x3a6   :  { %v929_v54 = vadd.f32 %v928_v52, %v2832_v56  ;;  %v1023_v1 = vpop.f32.mrb[32].mxu1  ;;  %v930_v3 = vpop.f32.mrb[33].mxu0  ;;  %v1049_v26 = vmax.f32 %v1020_v53, 0.0 }
 0x3a7   :  { %v1024_v4 = vadd.f32 %v1023_v1, %v2832_v56  ;;  %v931_v5 = vadd.f32 %v930_v3, %v2832_v56  ;;  %v1025_v6 = vpop.f32.mrb[33].mxu1 }
 0x3a8   :  { %v1050_v10 = vmax.f32 %v929_v54, 0.0  ;;  %v1026_v21 = vadd.f32 %v1025_v6, %v2832_v56 }
 0x3a9   :  { %v1052_v24 = vmax.f32 %v1024_v4, 0.0  ;;  %v1051_v13 = vmax.f32 %v931_v5, 0.0  ;;  %v934_v25 = vpop.f32.mrb[34].mxu0 }
 0x3aa   :  { %v2411_v14 = vpack.c.bf16 %v1050_v10, %v1046_v9  ;;  %v1053_v27 = vmax.f32 %v1026_v21, 0.0  ;;  %v1029_v11 = vpop.f32.mrb[34].mxu1  ;;  %v936_v28 = vpop.f32.mrb[35].mxu0  ;;  %v935_v33 = vadd.f32 %v934_v25, %v2767_v15 }
 0x3ab   :  { %v2419_v29 = vpack.c.bf16 %v1052_v24, %v1048_v22  ;;  %v2409_v30 = vpack.c.bf16 %v1051_v13, %v1047_v23  ;;  %v1031_v31 = vpop.f32.mrb[35].mxu1  ;;  %v1030_v35 = vadd.f32 %v1029_v11, %v2767_v15  ;;  %v937_v56 = vadd.f32 %v936_v28, %v2767_v15  ;;  %v2269_v11 = vld [vmem:[%s3188_s1 + $0xc0] sm:$0x1] }
 0x3ac   :  { %v2417_v32 = vpack.c.bf16 %v1053_v27, %v1049_v26  ;;  %v1032_v36 = vadd.f32 %v1031_v31, %v2767_v15  ;;  %v1054_v63 = vmax.f32 %v935_v33, 0.0  ;;  %v2265_v26 = vld [vmem:[%s3188_s1 + $0xa0] sm:$0xff] }
 0x3ad   :  { %v940_v55 = vpop.f32.mrb[36].mxu0  ;;  %2410 = vmatprep.subr.bf16.mxu0 %v2409_v30  ;;  %v1056_v47 = vmax.f32 %v1030_v35, 0.0  ;;  %v1055_v15 = vmax.f32 %v937_v56, 0.0 }
 0x3ae   :  { %v941_v37 = vadd.f32 %v940_v55, %v2834_v57  ;;  %v1035_v38 = vpop.f32.mrb[36].mxu1  ;;  %2418 = vmatprep.subr.bf16.mxu1 %v2417_v32  ;;  %v942_v40 = vpop.f32.mrb[37].mxu0  ;;  %2412 = vmatpush1.bf16.msra.mxu0 %v2411_v14  ;;  %v1057_v51 = vmax.f32 %v1032_v36, 0.0 }
 0x3af   :  { %v1036_v41 = vadd.f32 %v1035_v38, %v2834_v57  ;;  %v943_v50 = vadd.f32 %v942_v40, %v2834_v57  ;;  %v1037_v62 = vpop.f32.mrb[37].mxu1  ;;  %2420 = vmatpush1.bf16.msra.mxu1 %v2419_v29 }
 0x3b0   :  { %v1058_v44 = vmax.f32 %v941_v37, 0.0  ;;  %v1038_v45 = vadd.f32 %v1037_v62, %v2834_v57 }
 0x3b1   :  { %v1060_v49 = vmax.f32 %v1036_v41, 0.0  ;;  %v1059_v58 = vmax.f32 %v943_v50, 0.0  ;;  %v946_v2 = vpop.f32.mrb[38].mxu0 }
 0x3b2   :  { %v2415_v52 = vpack.c.bf16 %v1058_v44, %v1054_v63  ;;  %v1061_v53 = vmax.f32 %v1038_v45, 0.0  ;;  %v947_v54 = vadd.f32 %v946_v2, %v839_v46  ;;  %v1041_v1 = vpop.f32.mrb[38].mxu1  ;;  %v948_v3 = vpop.f32.mrb[39].mxu0 }
 0x3b3   :  { %v2423_v4 = vpack.c.bf16 %v1060_v49, %v1056_v47  ;;  %v2413_v5 = vpack.c.bf16 %v1059_v58, %v1055_v15  ;;  %v1042_v6 = vadd.f32 %v1041_v1, %v839_v46  ;;  %v949_v9 = vadd.f32 %v948_v3, %v839_v46  ;;  %v1043_v10 = vpop.f32.mrb[39].mxu1 }
 0x3b4   :  { %v2421_v21 = vpack.c.bf16 %v1061_v53, %v1057_v51  ;;  %v2086_v57 = vrot.slane %v947_v54, 5  ;;  %v1044_v22 = vadd.f32 %v1043_v10, %v839_v46 }
 0x3b5   :  { %v2088_v23 = vrot.slane %v1042_v6, 5  ;;  %v2087_v24 = vrot.slane %v949_v9, 5  ;;  %2414 = vmatprep.subr.bf16.mxu0 %v2413_v5 }
 0x3b6   :  { %v2925_v13 = vsel %vm2152_vm3, %v2858_v39, %v2086_v57  ;;  %v2089_v25 = vrot.slane %v1044_v22, 5  ;;  %2422 = vmatprep.subr.bf16.mxu1 %v2421_v21  ;;  %2416 = vmatpush1.bf16.msra.mxu0 %v2415_v52 }
 0x3b7   :  { %v2932_v14 = vsel %vm2152_vm3, %v2865_v42, %v2088_v23  ;;  %v2936_v27 = vsel %vm2152_vm3, %v2869_v43, %v2087_v24  ;;  %2424 = vmatpush1.bf16.msra.mxu1 %v2423_v4  ;;  %v2266_v42 = vld [vmem:[%s3188_s1 + $0xa8] sm:$0xff]  ;;  %v2267_v43 = vld [vmem:[%s3188_s1 + $0xb0] sm:$0xff] }
 0x3b8   :  { %v2940_v39 = vsel %vm2152_vm3, %v2873_v48, %v2089_v25  ;;  %v2268_v48 = vld [vmem:[%s3188_s1 + $0xb8] sm:$0xff] }
 0x3b9   :  { %2275 = vmatmul.mubr.msk.f32.vlgmr.msra.gmra.mrb[40].mxu0 %vm66_vm0, %v2265_v26 }
 0x3ba   :  { %2280 = vmatmul.mubr.msk.f32.vlgmr.msra.gmra.mrb[40].mxu1 %vm66_vm0, %v2265_v26  ;;  %1184 = vmatprep.mubr.f32.mxu0 %v2502_v7 }
 0x3bb   :  { %1279 = vmatprep.mubr.f32.mxu1 %v2502_v7 }
 0x3bd   :  { %2276 = vmatmul.mubr.msk.f32.gmra.mrb[42].mxu0 %vm66_vm0, %v2266_v42 }
 0x3be   :  { %2281 = vmatmul.mubr.msk.f32.gmra.mrb[42].mxu1 %vm66_vm0, %v2266_v42  ;;  %1190 = vmatprep.mubr.f32.mxu0 %v2502_v7 }
 0x3bf   :  { %1285 = vmatprep.mubr.f32.mxu1 %v2502_v7 }
 0x3c1   :  { %2277 = vmatmul.mubr.msk.f32.gmra.mrb[44].mxu0 %vm66_vm0, %v2267_v43 }
 0x3c2   :  { %2282 = vmatmul.mubr.msk.f32.gmra.mrb[44].mxu1 %vm66_vm0, %v2267_v43  ;;  %1196 = vmatprep.mubr.f32.mxu0 %v2502_v7  ;;  %v1097_v43 = vpop.permute.xlu0 %1096 }
 0x3c3   :  { %1291 = vmatprep.mubr.f32.mxu1 %v2502_v7 }
 0x3c5   :  { %2278 = vmatmul.mubr.msk.f32.gmra.mrb[46].mxu0 %vm66_vm0, %v2268_v48 }
 0x3c6   :  { %2283 = vmatmul.mubr.msk.f32.gmra.mrb[46].mxu1 %vm66_vm0, %v2268_v48  ;;  %1202 = vmatprep.mubr.f32.mxu0 %v2502_v7 }
 0x3c7   :  { %1297 = vmatprep.mubr.f32.mxu1 %v2502_v7 }
 0x3c9   :  { %2279 = vmatmul.mubr.msk.f32.gmra.mrb[48].mxu0 %vm66_vm0, %v2269_v11 }
 0x3ca   :  { %2284 = vmatmul.mubr.msk.f32.gmra.mrb[48].mxu1 %vm66_vm0, %v2269_v11  ;;  %1436 = vmatprep.mubr.f32.mxu0 %v2502_v7 }
 0x3cb   :  { %1531 = vmatprep.mubr.f32.mxu1 %v2502_v7 }
 0x48c   :  { %v1180_v28 = vpop.f32.mrb[40].mxu0 }
 0x48d   :  { %v1275_v29 = vpop.f32.mrb[40].mxu1  ;;  %v1182_v30 = vpop.f32.mrb[41].mxu0  ;;  %v1181_v32 = vadd.f32 %v1180_v28, %v2769_v16 }
 0x48e   :  { %v1277_v31 = vpop.f32.mrb[41].mxu1  ;;  %v1276_v33 = vadd.f32 %v1275_v29, %v2769_v16  ;;  %v1183_v35 = vadd.f32 %v1182_v30, %v2769_v16 }
 0x48f   :  { %v1278_v55 = vadd.f32 %v1277_v31, %v2769_v16  ;;  %v1304_v62 = vmax.f32 %v1181_v32, 0.0 }
 0x490   :  { %v1186_v56 = vpop.f32.mrb[42].mxu0  ;;  %v1306_v45 = vmax.f32 %v1276_v33, 0.0  ;;  %v1305_v46 = vmax.f32 %v1183_v35, 0.0 }
 0x491   :  { %v1187_v36 = vadd.f32 %v1186_v56, %v2836_v59  ;;  %v1281_v37 = vpop.f32.mrb[42].mxu1  ;;  %v1188_v38 = vpop.f32.mrb[43].mxu0  ;;  %v1307_v58 = vmax.f32 %v1278_v55, 0.0 }
 0x492   :  { %v1282_v40 = vadd.f32 %v1281_v37, %v2836_v59  ;;  %v1189_v41 = vadd.f32 %v1188_v38, %v2836_v59  ;;  %v1283_v50 = vpop.f32.mrb[43].mxu1 }
 0x493   :  { %v1308_v63 = vmax.f32 %v1187_v36, 0.0  ;;  %v1284_v44 = vadd.f32 %v1283_v50, %v2836_v59 }
 0x494   :  { %v1310_v47 = vmax.f32 %v1282_v40, 0.0  ;;  %v1309_v15 = vmax.f32 %v1189_v41, 0.0  ;;  %v1192_v49 = vpop.f32.mrb[44].mxu0 }
 0x495   :  { %v2427_v16 = vpack.c.bf16 %v1308_v63, %v1304_v62  ;;  %v1311_v2 = vmax.f32 %v1284_v44, 0.0  ;;  %v1287_v51 = vpop.f32.mrb[44].mxu1  ;;  %v1194_v52 = vpop.f32.mrb[45].mxu0  ;;  %v1193_v4 = vadd.f32 %v1192_v49, %v2771_v17  ;;  %v2289_v49 = vld [vmem:[%s3188_s1 + $0xe8] sm:$0x1] }
 0x496   :  { %v2435_v53 = vpack.c.bf16 %v1310_v47, %v1306_v45  ;;  %v2425_v54 = vpack.c.bf16 %v1309_v15, %v1305_v46  ;;  %v1289_v1 = vpop.f32.mrb[45].mxu1  ;;  %v1288_v5 = vadd.f32 %v1287_v51, %v2771_v17  ;;  %v1195_v59 = vadd.f32 %v1194_v52, %v2771_v17  ;;  %v2285_v46 = vld [vmem:[%s3188_s1 + $0xc8] sm:$0xff] }
 0x497   :  { %v2433_v3 = vpack.c.bf16 %v1311_v2, %v1307_v58  ;;  %v1290_v9 = vadd.f32 %v1289_v1, %v2771_v17  ;;  %v1312_v25 = vmax.f32 %v1193_v4, 0.0 }
 0x498   :  { %v1198_v6 = vpop.f32.mrb[46].mxu0  ;;  %2426 = vmatprep.subr.bf16.mxu0 %v2425_v54  ;;  %v1314_v48 = vmax.f32 %v1288_v5, 0.0  ;;  %v1313_v17 = vmax.f32 %v1195_v59, 0.0 }
 0x499   :  { %v1199_v10 = vadd.f32 %v1198_v6, %v2838_v60  ;;  %v1293_v21 = vpop.f32.mrb[46].mxu1  ;;  %2434 = vmatprep.subr.bf16.mxu1 %v2433_v3  ;;  %v1200_v57 = vpop.f32.mrb[47].mxu0  ;;  %2428 = vmatpush1.bf16.msra.mxu0 %v2427_v16  ;;  %v1315_v30 = vmax.f32 %v1290_v9, 0.0 }
 0x49a   :  { %v1294_v22 = vadd.f32 %v1293_v21, %v2838_v60  ;;  %v1201_v23 = vadd.f32 %v1200_v57, %v2838_v60  ;;  %v1295_v24 = vpop.f32.mrb[47].mxu1  ;;  %2436 = vmatpush1.bf16.msra.mxu1 %v2435_v53 }
 0x49b   :  { %v1316_v26 = vmax.f32 %v1199_v10, 0.0  ;;  %v1296_v42 = vadd.f32 %v1295_v24, %v2838_v60 }
 0x49c   :  { %v1318_v11 = vmax.f32 %v1294_v22, 0.0  ;;  %v1317_v28 = vmax.f32 %v1201_v23, 0.0  ;;  %v1204_v29 = vpop.f32.mrb[48].mxu0 }
 0x49d   :  { %v2431_v31 = vpack.c.bf16 %v1316_v26, %v1312_v25  ;;  %v1319_v32 = vmax.f32 %v1296_v42, 0.0  ;;  %v1205_v33 = vadd.f32 %v1204_v29, %v1097_v43  ;;  %v1299_v35 = vpop.f32.mrb[48].mxu1  ;;  %v1206_v56 = vpop.f32.mrb[49].mxu0 }
 0x49e   :  { %v2439_v55 = vpack.c.bf16 %v1318_v11, %v1314_v48  ;;  %v2429_v36 = vpack.c.bf16 %v1317_v28, %v1313_v17  ;;  %v1300_v37 = vadd.f32 %v1299_v35, %v1097_v43  ;;  %v1207_v38 = vadd.f32 %v1206_v56, %v1097_v43  ;;  %v1301_v40 = vpop.f32.mrb[49].mxu1 }
 0x49f   :  { %v2437_v41 = vpack.c.bf16 %v1319_v32, %v1315_v30  ;;  %v2098_v60 = vrot.slane %v1205_v33, 4  ;;  %v1302_v50 = vadd.f32 %v1301_v40, %v1097_v43 }
 0x4a0   :  { %v2100_v62 = vrot.slane %v1300_v37, 4  ;;  %v2099_v63 = vrot.slane %v1207_v38, 4  ;;  %2430 = vmatprep.subr.bf16.mxu0 %v2429_v36 }
 0x4a1   :  { %v2992_v44 = vsel %vm2157_vm4, %v2925_v13, %v2098_v60  ;;  %v2101_v45 = vrot.slane %v1302_v50, 4  ;;  %2438 = vmatprep.subr.bf16.mxu1 %v2437_v41  ;;  %2432 = vmatpush1.bf16.msra.mxu0 %v2431_v31 }
 0x4a2   :  { %v2999_v47 = vsel %vm2157_vm4, %v2932_v14, %v2100_v62  ;;  %v3003_v15 = vsel %vm2157_vm4, %v2936_v27, %v2099_v63  ;;  %2440 = vmatpush1.bf16.msra.mxu1 %v2439_v55  ;;  %v2286_v14 = vld [vmem:[%s3188_s1 + $0xd0] sm:$0xff]  ;;  %v2287_v27 = vld [vmem:[%s3188_s1 + $0xd8] sm:$0xff]  ;;  %v1355_v63 = vpop.permute.xlu1 %1354 }
 0x4a3   :  { %v3007_v13 = vsel %vm2157_vm4, %v2940_v39, %v2101_v45  ;;  %v2288_v39 = vld [vmem:[%s3188_s1 + $0xe0] sm:$0xff] }
 0x4a4   :  { %2295 = vmatmul.mubr.msk.f32.vlgmr.msra.gmra.mrb[50].mxu0 %vm66_vm0, %v2285_v46 }
 0x4a5   :  { %2300 = vmatmul.mubr.msk.f32.vlgmr.msra.gmra.mrb[50].mxu1 %vm66_vm0, %v2285_v46  ;;  %1442 = vmatprep.mubr.f32.mxu0 %v2502_v7 }
 0x4a6   :  { %1537 = vmatprep.mubr.f32.mxu1 %v2502_v7 }
 0x4a8   :  { %2296 = vmatmul.mubr.msk.f32.gmra.mrb[52].mxu0 %vm66_vm0, %v2286_v14 }
 0x4a9   :  { %2301 = vmatmul.mubr.msk.f32.gmra.mrb[52].mxu1 %vm66_vm0, %v2286_v14  ;;  %1448 = vmatprep.mubr.f32.mxu0 %v2502_v7 }
 0x4aa   :  { %1543 = vmatprep.mubr.f32.mxu1 %v2502_v7 }
 0x4ac   :  { %2297 = vmatmul.mubr.msk.f32.gmra.mrb[54].mxu0 %vm66_vm0, %v2287_v27 }
 0x4ad   :  { %2302 = vmatmul.mubr.msk.f32.gmra.mrb[54].mxu1 %vm66_vm0, %v2287_v27  ;;  %1454 = vmatprep.mubr.f32.mxu0 %v2502_v7 }
 0x4ae   :  { %1549 = vmatprep.mubr.f32.mxu1 %v2502_v7 }
 0x4b0   :  { %2298 = vmatmul.mubr.msk.f32.gmra.mrb[56].mxu0 %vm66_vm0, %v2288_v39 }
 0x4b1   :  { %2303 = vmatmul.mubr.msk.f32.gmra.mrb[56].mxu1 %vm66_vm0, %v2288_v39  ;;  %1460 = vmatprep.mubr.f32.mxu0 %v2502_v7 }
 0x4b2   :  { %1555 = vmatprep.mubr.f32.mxu1 %v2502_v7 }
 0x4b4   :  { %2299 = vmatmul.mubr.msk.f32.gmra.mrb[58].mxu0 %vm66_vm0, %v2289_v49 }
 0x4b5   :  { %2304 = vmatmul.mubr.msk.f32.gmra.mrb[58].mxu1 %vm66_vm0, %v2289_v49  ;;  %1694 = vmatprep.mubr.f32.mxu0 %v2502_v7 }
 0x4b6   :  { %1789 = vmatprep.mubr.f32.mxu1 %v2502_v7 }
 0x577   :  { %v1438_v58 = vpop.f32.mrb[50].mxu0 }
 0x578   :  { %v1533_v16 = vpop.f32.mrb[50].mxu1  ;;  %v1440_v2 = vpop.f32.mrb[51].mxu0  ;;  %v1439_v52 = vadd.f32 %v1438_v58, %v2773_v18 }
 0x579   :  { %v1535_v51 = vpop.f32.mrb[51].mxu1  ;;  %v1534_v53 = vadd.f32 %v1533_v16, %v2773_v18  ;;  %v1441_v54 = vadd.f32 %v1440_v2, %v2773_v18 }
 0x57a   :  { %v1536_v3 = vadd.f32 %v1535_v51, %v2773_v18  ;;  %v1562_v21 = vmax.f32 %v1439_v52, 0.0 }
 0x57b   :  { %v1444_v1 = vpop.f32.mrb[52].mxu0  ;;  %v1564_v23 = vmax.f32 %v1534_v53, 0.0  ;;  %v1563_v24 = vmax.f32 %v1441_v54, 0.0 }
 0x57c   :  { %v1445_v4 = vadd.f32 %v1444_v1, %v2840_v61  ;;  %v1539_v5 = vpop.f32.mrb[52].mxu1  ;;  %v1446_v59 = vpop.f32.mrb[53].mxu0  ;;  %v1565_v43 = vmax.f32 %v1536_v3, 0.0 }
 0x57d   :  { %v1540_v6 = vadd.f32 %v1539_v5, %v2840_v61  ;;  %v1447_v9 = vadd.f32 %v1446_v59, %v2840_v61  ;;  %v1541_v10 = vpop.f32.mrb[53].mxu1 }
 0x57e   :  { %v1566_v57 = vmax.f32 %v1445_v4, 0.0  ;;  %v1542_v22 = vadd.f32 %v1541_v10, %v2840_v61 }
 0x57f   :  { %v1568_v25 = vmax.f32 %v1540_v6, 0.0  ;;  %v1567_v26 = vmax.f32 %v1447_v9, 0.0  ;;  %v1450_v42 = vpop.f32.mrb[54].mxu0 }
 0x580   :  { %v2443_v18 = vpack.c.bf16 %v1566_v57, %v1562_v21  ;;  %v1569_v48 = vmax.f32 %v1542_v22, 0.0  ;;  %v1545_v17 = vpop.f32.mrb[54].mxu1  ;;  %v1452_v11 = vpop.f32.mrb[55].mxu0  ;;  %v1451_v32 = vadd.f32 %v1450_v42, %v2775_v19  ;;  %v2305_v21 = vld [vmem:[%s3188_s1 + $0xf0] sm:$0xff] }
 0x581   :  { %v2451_v28 = vpack.c.bf16 %v1568_v25, %v1564_v23  ;;  %v2441_v29 = vpack.c.bf16 %v1567_v26, %v1563_v24  ;;  %v1547_v30 = vpop.f32.mrb[55].mxu1  ;;  %v1546_v33 = vadd.f32 %v1545_v17, %v2775_v19  ;;  %v1453_v61 = vadd.f32 %v1452_v11, %v2775_v19  ;;  %v2309_v23 = vld [vmem:[%s3188_s1 + $0x110] sm:$0x1] }
 0x582   :  { %v2449_v31 = vpack.c.bf16 %v1569_v48, %v1565_v43  ;;  %v1548_v56 = vadd.f32 %v1547_v30, %v2775_v19  ;;  %v1570_v60 = vmax.f32 %v1451_v32, 0.0 }
 0x583   :  { %v1456_v35 = vpop.f32.mrb[56].mxu0  ;;  %2442 = vmatprep.subr.bf16.mxu0 %v2441_v29  ;;  %v1572_v45 = vmax.f32 %v1546_v33, 0.0  ;;  %v1571_v19 = vmax.f32 %v1453_v61, 0.0 }
 0x584   :  { %v1457_v55 = vadd.f32 %v1456_v35, %v2842_v0  ;;  %v1551_v36 = vpop.f32.mrb[56].mxu1  ;;  %2450 = vmatprep.subr.bf16.mxu1 %v2449_v31  ;;  %v1458_v37 = vpop.f32.mrb[57].mxu0  ;;  %2444 = vmatpush1.bf16.msra.mxu0 %v2443_v18  ;;  %v1573_v39 = vmax.f32 %v1548_v56, 0.0 }
 0x585   :  { %v1552_v38 = vadd.f32 %v1551_v36, %v2842_v0  ;;  %v1459_v40 = vadd.f32 %v1458_v37, %v2842_v0  ;;  %v1553_v41 = vpop.f32.mrb[57].mxu1  ;;  %2452 = vmatpush1.bf16.msra.mxu1 %v2451_v28 }
 0x586   :  { %v1574_v50 = vmax.f32 %v1457_v55, 0.0  ;;  %v1554_v62 = vadd.f32 %v1553_v41, %v2842_v0 }
 0x587   :  { %v1576_v46 = vmax.f32 %v1552_v38, 0.0  ;;  %v1575_v14 = vmax.f32 %v1459_v40, 0.0  ;;  %v1462_v27 = vpop.f32.mrb[58].mxu0 }
 0x588   :  { %v2447_v49 = vpack.c.bf16 %v1574_v50, %v1570_v60  ;;  %v1577_v58 = vmax.f32 %v1554_v62, 0.0  ;;  %v1463_v16 = vadd.f32 %v1462_v27, %v1355_v63  ;;  %v1557_v2 = vpop.f32.mrb[58].mxu1  ;;  %v1464_v51 = vpop.f32.mrb[59].mxu0 }
 0x589   :  { %v2455_v52 = vpack.c.bf16 %v1576_v46, %v1572_v45  ;;  %v2445_v53 = vpack.c.bf16 %v1575_v14, %v1571_v19  ;;  %v1558_v54 = vadd.f32 %v1557_v2, %v1355_v63  ;;  %v1465_v1 = vadd.f32 %v1464_v51, %v1355_v63  ;;  %v1559_v3 = vpop.f32.mrb[59].mxu1 }
 0x58a   :  { %v2453_v4 = vpack.c.bf16 %v1577_v58, %v1573_v39  ;;  %v2110_v0 = vrot.slane %v1463_v16, 3  ;;  %v1560_v5 = vadd.f32 %v1559_v3, %v1355_v63 }
 0x58b   :  { %v2112_v59 = vrot.slane %v1558_v54, 3  ;;  %v2111_v6 = vrot.slane %v1465_v1, 3  ;;  %2446 = vmatprep.subr.bf16.mxu0 %v2445_v53 }
 0x58c   :  { %v3059_v9 = vsel %vm2162_vm5, %v2992_v44, %v2110_v0  ;;  %v2113_v10 = vrot.slane %v1560_v5, 3  ;;  %2454 = vmatprep.subr.bf16.mxu1 %v2453_v4  ;;  %2448 = vmatpush1.bf16.msra.mxu0 %v2447_v49  ;;  %v1613_v4 = vpop.permute.xlu0 %1612 }
 0x58d   :  { %v3066_v57 = vsel %vm2162_vm5, %v2999_v47, %v2112_v59  ;;  %v3070_v22 = vsel %vm2162_vm5, %v3003_v15, %v2111_v6  ;;  %2456 = vmatpush1.bf16.msra.mxu1 %v2455_v52  ;;  %v2306_v47 = vld [vmem:[%s3188_s1 + $0xf8] sm:$0xff]  ;;  %v2307_v15 = vld [vmem:[%s3188_s1 + $0x100] sm:$0xff] }
 0x58e   :  { %v3074_v44 = vsel %vm2162_vm5, %v3007_v13, %v2113_v10  ;;  %v2308_v13 = vld [vmem:[%s3188_s1 + $0x108] sm:$0xff] }
 0x58f   :  { %2315 = vmatmul.mubr.msk.f32.vlgmr.msra.gmra.mrb[60].mxu0 %vm66_vm0, %v2305_v21 }
 0x590   :  { %2320 = vmatmul.mubr.msk.f32.vlgmr.msra.gmra.mrb[60].mxu1 %vm66_vm0, %v2305_v21  ;;  %1700 = vmatprep.mubr.f32.mxu0 %v2502_v7 }
 0x591   :  { %1795 = vmatprep.mubr.f32.mxu1 %v2502_v7 }
 0x593   :  { %2316 = vmatmul.mubr.msk.f32.gmra.mrb[62].mxu0 %vm66_vm0, %v2306_v47 }
 0x594   :  { %2321 = vmatmul.mubr.msk.f32.gmra.mrb[62].mxu1 %vm66_vm0, %v2306_v47  ;;  %1706 = vmatprep.mubr.f32.mxu0 %v2502_v7 }
 0x595   :  { %1801 = vmatprep.mubr.f32.mxu1 %v2502_v7 }
 0x597   :  { %2317 = vmatmul.mubr.msk.f32.gmra.mrb[64].mxu0 %vm66_vm0, %v2307_v15 }
 0x598   :  { %2322 = vmatmul.mubr.msk.f32.gmra.mrb[64].mxu1 %vm66_vm0, %v2307_v15  ;;  %1712 = vmatprep.mubr.f32.mxu0 %v2502_v7 }
 0x599   :  { %1807 = vmatprep.mubr.f32.mxu1 %v2502_v7 }
 0x59b   :  { %2318 = vmatmul.mubr.msk.f32.gmra.mrb[66].mxu0 %vm66_vm0, %v2308_v13 }
 0x59c   :  { %2323 = vmatmul.mubr.msk.f32.gmra.mrb[66].mxu1 %vm66_vm0, %v2308_v13  ;;  %1718 = vmatprep.mubr.f32.mxu0 %v2502_v7 }
 0x59d   :  { %1813 = vmatprep.mubr.f32.mxu1 %v2502_v7 }
 0x59f   :  { %2319 = vmatmul.mubr.msk.f32.gmra.mrb[68].mxu0 %vm66_vm0, %v2309_v23 }
 0x5a0   :  { %2324 = vmatmul.mubr.msk.f32.gmra.mrb[68].mxu1 %vm66_vm0, %v2309_v23  ;;  %1948 = vmatprep.mubr.f32.mxu0 %v2502_v7 }
 0x5a1   :  { %2035 = vmatprep.mubr.f32.mxu1 %v2502_v7 }
 0x662   :  { %v1696_v24 = vpop.f32.mrb[60].mxu0 }
 0x663   :  { %v1791_v25 = vpop.f32.mrb[60].mxu1  ;;  %v1698_v26 = vpop.f32.mrb[61].mxu0  ;;  %v1697_v43 = vadd.f32 %v1696_v24, %v2777_v20 }
 0x664   :  { %v1793_v42 = vpop.f32.mrb[61].mxu1  ;;  %v1792_v18 = vadd.f32 %v1791_v25, %v2777_v20  ;;  %v1699_v48 = vadd.f32 %v1698_v26, %v2777_v20 }
 0x665   :  { %v1794_v11 = vadd.f32 %v1793_v42, %v2777_v20  ;;  %v1820_v61 = vmax.f32 %v1697_v43, 0.0 }
 0x666   :  { %v1702_v17 = vpop.f32.mrb[62].mxu0  ;;  %v1822_v55 = vmax.f32 %v1792_v18, 0.0  ;;  %v1821_v36 = vmax.f32 %v1699_v48, 0.0 }
 0x667   :  { %v1703_v28 = vadd.f32 %v1702_v17, %v2845_v8  ;;  %v1797_v29 = vpop.f32.mrb[62].mxu1  ;;  %v1704_v30 = vpop.f32.mrb[63].mxu0  ;;  %v1823_v41 = vmax.f32 %v1794_v11, 0.0 }
 0x668   :  { %v1798_v31 = vadd.f32 %v1797_v29, %v2845_v8  ;;  %v1705_v32 = vadd.f32 %v1704_v30, %v2845_v8  ;;  %v1799_v33 = vpop.f32.mrb[63].mxu1  ;;  %v2325_v30 = vld [vmem:[%s3188_s1 + $0x118] sm:$0xff] }
 0x669   :  { %v1824_v35 = vmax.f32 %v1703_v28, 0.0  ;;  %v1800_v56 = vadd.f32 %v1799_v33, %v2845_v8 }
 0x66a   :  { %v1826_v37 = vmax.f32 %v1798_v31, 0.0  ;;  %v1825_v38 = vmax.f32 %v1705_v32, 0.0  ;;  %v1708_v40 = vpop.f32.mrb[64].mxu0 }
 0x66b   :  { %v2459_v20 = vpack.c.bf16 %v1824_v35, %v1820_v61  ;;  %v1827_v60 = vmax.f32 %v1800_v56, 0.0  ;;  %v1803_v50 = vpop.f32.mrb[64].mxu1  ;;  %v1710_v62 = vpop.f32.mrb[65].mxu0  ;;  %v1709_v14 = vadd.f32 %v1708_v40, %v2779_v34 }
 0x66c   :  { %v2467_v63 = vpack.c.bf16 %v1826_v37, %v1822_v55  ;;  %v2457_v45 = vpack.c.bf16 %v1825_v38, %v1821_v36  ;;  %v1805_v19 = vpop.f32.mrb[65].mxu1  ;;  %v1804_v27 = vadd.f32 %v1803_v50, %v2779_v34  ;;  %v1711_v8 = vadd.f32 %v1710_v62, %v2779_v34 }
 0x66d   :  { %v2465_v46 = vpack.c.bf16 %v1827_v60, %v1823_v41  ;;  %v1806_v49 = vadd.f32 %v1805_v19, %v2779_v34  ;;  %v1828_v54 = vmax.f32 %v1709_v14, 0.0  ;;  %v1867_v19 = vpop.permute.xlu1 %1866 }
 0x66e   :  { %v1714_v39 = vpop.f32.mrb[66].mxu0  ;;  %2458 = vmatprep.subr.bf16.mxu0 %v2457_v45  ;;  %v1830_v0 = vmax.f32 %v1804_v27, 0.0  ;;  %v1829_v34 = vmax.f32 %v1711_v8, 0.0 }
 0x66f   :  { %v1715_v58 = vadd.f32 %v1714_v39, %v2850_v12  ;;  %v1809_v16 = vpop.f32.mrb[66].mxu1  ;;  %2466 = vmatprep.subr.bf16.mxu1 %v2465_v46  ;;  %v1716_v2 = vpop.f32.mrb[67].mxu0  ;;  %2460 = vmatpush1.bf16.msra.mxu0 %v2459_v20  ;;  %v1831_v10 = vmax.f32 %v1806_v49, 0.0 }
 0x670   :  { %v1810_v51 = vadd.f32 %v1809_v16, %v2850_v12  ;;  %v1717_v52 = vadd.f32 %v1716_v2, %v2850_v12  ;;  %v1811_v53 = vpop.f32.mrb[67].mxu1  ;;  %2468 = vmatpush1.bf16.msra.mxu1 %v2467_v63 }
 0x671   :  { %v1832_v1 = vmax.f32 %v1715_v58, 0.0  ;;  %v1812_v3 = vadd.f32 %v1811_v53, %v2850_v12 }
 0x672   :  { %v1834_v5 = vmax.f32 %v1810_v51, 0.0  ;;  %v1833_v59 = vmax.f32 %v1717_v52, 0.0  ;;  %v1720_v6 = vpop.f32.mrb[68].mxu0 }
 0x673   :  { %v2463_v21 = vpack.c.bf16 %v1832_v1, %v1828_v54  ;;  %v1835_v47 = vmax.f32 %v1812_v3, 0.0  ;;  %v1721_v15 = vadd.f32 %v1720_v6, %v1613_v4  ;;  %v1815_v13 = vpop.f32.mrb[68].mxu1  ;;  %v1722_v23 = vpop.f32.mrb[69].mxu0 }
 0x674   :  { %v2471_v24 = vpack.c.bf16 %v1834_v5, %v1830_v0  ;;  %v2461_v25 = vpack.c.bf16 %v1833_v59, %v1829_v34  ;;  %v1816_v26 = vadd.f32 %v1815_v13, %v1613_v4  ;;  %v1723_v42 = vadd.f32 %v1722_v23, %v1613_v4  ;;  %v1817_v43 = vpop.f32.mrb[69].mxu1 }
 0x675   :  { %v2469_v18 = vpack.c.bf16 %v1835_v47, %v1831_v10  ;;  %v2122_v12 = vrot.slane %v1721_v15, 2  ;;  %v1818_v48 = vadd.f32 %v1817_v43, %v1613_v4 }
 0x676   :  { %v2124_v17 = vrot.slane %v1816_v26, 2  ;;  %v2123_v11 = vrot.slane %v1723_v42, 2  ;;  %2462 = vmatprep.subr.bf16.mxu0 %v2461_v25 }
 0x677   :  { %v3126_v28 = vsel %vm2167_vm6, %v3059_v9, %v2122_v12  ;;  %v2125_v29 = vrot.slane %v1818_v48, 2  ;;  %2470 = vmatprep.subr.bf16.mxu1 %v2469_v18  ;;  %2464 = vmatpush1.bf16.msra.mxu0 %v2463_v21  ;;  %v2326_v9 = vld [vmem:[%s3188_s1 + $0x120] sm:$0xff] }
 0x678   :  { %v2170_v31 = vsel %vm2167_vm6, %v3066_v57, %v2124_v17  ;;  %v2169_v32 = vsel %vm2167_vm6, %v3070_v22, %v2123_v11  ;;  %2472 = vmatpush1.bf16.msra.mxu1 %v2471_v24  ;;  %v2327_v57 = vld [vmem:[%s3188_s1 + $0x128] sm:$0xff]  ;;  %v2328_v22 = vld [vmem:[%s3188_s1 + $0x130] sm:$0xff] }
 0x679   :  { %v3137_v33 = vsel %vm2167_vm6, %v3074_v44, %v2125_v29  ;;  %v2329_v44 = vld [vmem:[%s3188_s1 + $0x138] sm:$0x1]  ;;  %s2504_s1 = smov [#allocation2]  }
 0x67a   :  { %2335 = vmatmul.mubr.msk.f32.vlgmr.msra.gmra.mrb[70].mxu0 %vm66_vm0, %v2325_v30  ;;  %s2187_s25 = sshll.u32 %s2504_s1, 4  ;;  %s2188_s25 = int_to_ptr.vmem [resolvable:$true] %s2187_s25 }
 0x67b   :  { %2340 = vmatmul.mubr.msk.f32.vlgmr.msra.gmra.mrb[70].mxu1 %vm66_vm0, %v2325_v30  ;;  %1952 = vmatprep.mubr.f32.mxu0 %v2502_v7  ;;  %s2478_s26 = scalar_lea.vmem %s2188_s25, 512  ;;  %p2483_p1 = scmp.lt.s32.totalorder %s2188_s25, %s2188_s25 }
 0x67c   :  { %2039 = vmatprep.mubr.f32.mxu1 %v2502_v7  ;;  %p2479_p0 = scmp.ne.s32.totalorder %s2188_s25, %s2478_s26  ;;  %p2484_p2 = scmp.lt.s32.totalorder %s2478_s26, %s2478_s26 }
 0x67e   :  { %2336 = vmatmul.mubr.msk.f32.gmra.mrb[72].mxu0 %vm66_vm0, %v2326_v9  ;;  %p2485_p3 = por %p2484_p2, %p2483_p1 }
 0x67f   :  { %2341 = vmatmul.mubr.msk.f32.gmra.mrb[72].mxu1 %vm66_vm0, %v2326_v9  ;;  %1956 = vmatprep.mubr.f32.mxu0 %v2502_v7 }
 0x680   :  { %2043 = vmatprep.mubr.f32.mxu1 %v2502_v7  ;;  %p2486_p4 = pnand %p2485_p3, %p2479_p0 }
 0x682   :  { %2337 = vmatmul.mubr.msk.f32.gmra.mrb[74].mxu0 %vm66_vm0, %v2327_v57 }
 0x683   :  { %2342 = vmatmul.mubr.msk.f32.gmra.mrb[74].mxu1 %vm66_vm0, %v2327_v57  ;;  %1960 = vmatprep.mubr.f32.mxu0 %v2502_v7 }
 0x684   :  { %2047 = vmatprep.mubr.f32.mxu1 %v2502_v7 }
 0x686   :  { %2338 = vmatmul.mubr.msk.f32.gmra.mrb[76].mxu0 %vm66_vm0, %v2328_v22 }
 0x687   :  { %2343 = vmatmul.mubr.msk.f32.gmra.mrb[76].mxu1 %vm66_vm0, %v2328_v22  ;;  %1964 = vmatprep.mubr.f32.mxu0 %v2502_v7 }
 0x688   :  { %2051 = vmatprep.mubr.f32.mxu1 %v2502_v7 }
 0x68a   :  { %2339 = vmatmul.mubr.msk.f32.gmra.mrb[78].mxu0 %vm66_vm0, %v2329_v44 }
 0x68b   :  { %2344 = vmatmul.mubr.msk.f32.gmra.mrb[78].mxu1 %vm66_vm0, %v2329_v44 }
 0x74d   :  { %v1950_v61 = vpop.f32.mrb[70].mxu0 }
 0x74e   :  { %v2037_v35 = vpop.f32.mrb[70].mxu1  ;;  %v1951_v56 = vpop.f32.mrb[71].mxu0 }
 0x74f   :  { %v2038_v55 = vpop.f32.mrb[71].mxu1 }
 0x751   :  { %v1954_v36 = vpop.f32.mrb[72].mxu0 }
 0x752   :  { %v2041_v37 = vpop.f32.mrb[72].mxu1  ;;  %v1955_v38 = vpop.f32.mrb[73].mxu0 }
 0x753   :  { %v2042_v40 = vpop.f32.mrb[73].mxu1 }
 0x755   :  { %v1958_v41 = vpop.f32.mrb[74].mxu0 }
 0x756   :  { %v2045_v20 = vpop.f32.mrb[74].mxu1  ;;  %v1959_v60 = vpop.f32.mrb[75].mxu0 }
 0x757   :  { %v2046_v50 = vpop.f32.mrb[75].mxu1 }
 0x759   :  { %v1962_v62 = vpop.f32.mrb[76].mxu0 }
 0x75a   :  { %v2049_v63 = vpop.f32.mrb[76].mxu1  ;;  %v1963_v45 = vpop.f32.mrb[77].mxu0 }
 0x75b   :  { %v2050_v7 = vpop.f32.mrb[77].mxu1 }
 0x75d   :  { %v1966_v46 = vpop.f32.mrb[78].mxu0 }
 0x75e   :  { %v1967_v14 = vadd.f32 %v1966_v46, %v1867_v19  ;;  %v2053_v27 = vpop.f32.mrb[78].mxu1  ;;  %v1968_v8 = vpop.f32.mrb[79].mxu0 }
 0x75f   :  { %v2054_v39 = vadd.f32 %v2053_v27, %v1867_v19  ;;  %v1969_v49 = vadd.f32 %v1968_v8, %v1867_v19  ;;  %v2055_v58 = vpop.f32.mrb[79].mxu1 }
 0x760   :  { %v2134_v16 = vrot.slane %v1967_v14, 1  ;;  %v2056_v2 = vadd.f32 %v2055_v58, %v1867_v19 }
 0x761   :  { %v2136_v51 = vrot.slane %v2054_v39, 1  ;;  %v2135_v52 = vrot.slane %v1969_v49, 1 }
 0x762   :  { %v2173_v53 = vsel %vm2172_vm7, %v3126_v28, %v2134_v16  ;;  %v2137_v54 = vrot.slane %v2056_v2, 1 }
 0x763   :  { %2177 = vst [vmem:[#allocation2] sm:$0xff] %v2173_v53  ;;  %v2175_v1 = vsel %vm2172_vm7, %v2170_v31, %v2136_v51  ;;  %v2174_v3 = vsel %vm2172_vm7, %v2169_v32, %v2135_v52 }
 0x764   :  { %2179 = vst [vmem:[#allocation2 + $0x10] sm:$0xff] %v2175_v1  ;;  %2178 = vst [vmem:[#allocation2 + $0x8] sm:$0xff] %v2174_v3  ;;  %v2176_v4 = vsel %vm2172_vm7, %v3137_v33, %v2137_v54 }
 0x765   :  { %2180 = vst [vmem:[#allocation2 + $0x18] sm:$0xff] %v2176_v4 }
 0x766   :  { %2489 = shalt.err (!%p2486_p4)
}
 0x767   :  { %s2490_s29 = scalar_lea.hbm %s3190_s3, 512 }
 0x768   :  { %p2491_p5 = scmp.ne.s32.totalorder %s3190_s3, %s2490_s29  ;;  %p2494_p6 = scmp.lt.u32.totalorder %s2490_s29, %s3190_s3 }
 0x76a   :  { %p2496_p7 = pnand %p2494_p6, %p2491_p5 }
 0x76c   :  { %2499 = shalt.err (!%p2496_p7)
}
 0x76d   :  { %2190 = dma.vmem_to_hbm [thread:$0]  %s2188_s25, 512, %s3190_s3, [#allocation3]  }
 0x76e   :  { %2500 = dma.done.wait [#allocation3], 512  }
 0x76f   :  { %2501 = vsyncadd [#allocation3], 4294966784 }
 0x770   :  { %2194 = vsyncpa [#allocation3], 1 }

</bundles_post_ra>
